<compile_context>
chip_gen: v7x
topology: tpu7x:2x2x1
jax: 0.10.0
libtpu: 0.0.40
codegen_flags: <defaults>
</compile_context>

<pallas_src>
import functools

import jax
import jax.numpy as jnp
from jax.experimental import pallas as pl
from jax.experimental.pallas import tpu as pltpu

_VMEM = pl.BlockSpec(memory_space=pltpu.MemorySpace.VMEM)
PAD = 128  # lane-dense width for all feature / hidden / class dims


# ---------------------------------------------------------------------------
# Shared in-kernel helper: 3 branch MLPs -> weighted combine (h0)
# ---------------------------------------------------------------------------
def _mlp_combine(feat_refs, ws_ref, bs_ref, layers_per_branch, branch_weights):
    h0 = None
    for br, f_ref in enumerate(feat_refs):
        h = f_ref[...]
        for li in range(layers_per_branch):
            idx = br * layers_per_branch + li
            h = jnp.dot(h, ws_ref[idx], preferred_element_type=jnp.float32) + bs_ref[idx]
            if li < layers_per_branch - 1:
                h = jnp.maximum(h, 0.0)
        term = branch_weights[br] * h
        h0 = term if h0 is None else h0 + term
    return h0


# ---------------------------------------------------------------------------
# Kernel 1 (resident-A, grid-less): MLPs -> combine -> K-step PPR, fully fused
# ---------------------------------------------------------------------------
def _appnp_fused_kernel(
    a_hat_ref,                 # [Np, Np] pre-folded (1-alpha) * D^-1/2 A D^-1/2 (f32 or bf16)
    f1_ref, f2_ref, f3_ref,    # [Np, PAD] zero-padded branch features
    ws_ref,                    # [3L, PAD, PAD] zero-padded weights (y = x @ W), branch-major
    bs_ref,                    # [3L, 1, PAD]   zero-padded biases
    o_ref,                     # [Np, PAD] output (cols >= n_classes stay zero)
    *, alpha, k, layers_per_branch, branch_weights, prop_dtype,
):
    # Branch MLPs + linear combine BEFORE propagation (PPR is linear in h0).
    h0 = _mlp_combine((f1_ref, f2_ref, f3_ref), ws_ref, bs_ref,
                      layers_per_branch, branch_weights)

    a_hat = a_hat_ref[...]            # single resident N^2 buffer; no in-kernel re-fold
    h0_scaled = alpha * h0            # f32, hoisted out of the loop
    h = h0
    for _ in range(k):                # fully unrolled, K matmuls total
        h = jnp.dot(a_hat, h.astype(prop_dtype),
                    preferred_element_type=jnp.float32) + h0_scaled
    o_ref[...] = h.astype(o_ref.dtype)


# ---------------------------------------------------------------------------
# Kernel 2 (streamed large-N): grid = (K+1, row_blocks)
#   s == 0      : per-row-block MLP + combine -> h0 scratch and h ping-pong slot 0
#   s == 1..K   : row block of h_{t+1} = A_hat[rows] @ h_t + alpha * h0[rows]
# A_hat is streamed from HBM as (TM, Np) row tiles every step; h0 / h ping-pong are
# resident VMEM scratch.  Both grid axes are "arbitrary" (sequential dependence on h_t).
# ---------------------------------------------------------------------------
def _appnp_stream_kernel(
    a_hat_ref,                 # (TM, Np) row tile of the folded operator
    f1_ref, f2_ref, f3_ref,    # (TM, PAD) feature row tiles
    ws_ref, bs_ref,            # resident weights / biases
    o_ref,                     # (TM, PAD) output row tile
    h0_scr,                    # [Np, PAD] f32 combined MLP output
    h_scr,                     # [2, Np, PAD] f32 ping-pong propagation state
    *, alpha, k, layers_per_branch, branch_weights, prop_dtype, tm,
):
    s = pl.program_id(0)               # 0 = MLP pass, 1..K = propagation steps
    i = pl.program_id(1)               # row block
    row0 = pl.multiple_of(i * tm, tm)

    @pl.when(s == 0)
    def _mlp_pass():
        h0 = _mlp_combine((f1_ref, f2_ref, f3_ref), ws_ref, bs_ref,
                          layers_per_branch, branch_weights)
        h0_scr[pl.ds(row0, tm), :] = h0
        h_scr[0, pl.ds(row0, tm), :] = h0
        o_ref[...] = h0.astype(o_ref.dtype)     # keeps output buffer defined; overwritten later

    @pl.when(s > 0)
    def _prop_pass():
        t = s - 1
        read_slot = t % 2
        write_slot = (t + 1) % 2
        h_t = h_scr[read_slot]                  # full [Np, PAD] previous state
        h0_rows = h0_scr[pl.ds(row0, tm), :]
        new_rows = jnp.dot(a_hat_ref[...], h_t.astype(prop_dtype),
                           preferred_element_type=jnp.float32) + alpha * h0_rows
        h_scr[write_slot, pl.ds(row0, tm), :] = new_rows
        o_ref[...] = new_rows.astype(o_ref.dtype)


# ---------------------------------------------------------------------------
# Wrapper
# ---------------------------------------------------------------------------
def _round_up(x, m):
    return ((x + m - 1) // m) * m


def _pad2(x, rows, cols):
    return jnp.pad(x, ((0, rows - x.shape[0]), (0, cols - x.shape[1])))


def _vmem_capacity_bytes():
    try:
        info = pltpu.get_tpu_info()
        cap = getattr(info, "vmem_capacity_bytes", None)
        if cap:
            return int(cap)
    except Exception:
        pass
    return 64 << 20   # conservative fallback: v7x per-TC physical VMEM


def appnp_forward(params, adj, norm, f1, f2, f3, *, alpha, k, a1, a2, a3,
                  n_classes, prop_dtype=jnp.float32, force_streamed=False,
                  row_block=512):
    """params: tuple of 3 branches, each a list of (W[in,out], b[1,out])."""
    n = adj.shape[0]
    layers_per_branch = len(params[0])
    np_ = max(_round_up(n, 128), 128)           # row padding: sublane + MXU alignment

    # Fold norm and (1-alpha) into the adjacency ONCE, outside the kernel (plain XLA),
    # so only a single N^2 buffer is live in kernel VMEM.
    a_hat = ((1.0 - alpha) * norm) * adj * norm.reshape(1, n)
    a_hat = jnp.pad(a_hat, ((0, np_ - n), (0, np_ - n))).astype(prop_dtype)

    # Zero-pad + stack parameters (branch-major) so the kernel sees lane-dense tiles.
    ws = jnp.stack([_pad2(w, PAD, PAD) for branch in params for (w, _) in branch])
    bs = jnp.stack([_pad2(b, 1, PAD) for branch in params for (_, b) in branch])
    f1p = _pad2(f1, np_, PAD)
    f2p = _pad2(f2, np_, PAD)
    f3p = _pad2(f3, np_, PAD)

    itemsize = jnp.dtype(prop_dtype).itemsize
    budget = int(0.70 * _vmem_capacity_bytes())
    nL = 3 * layers_per_branch
    param_bytes = nL * (PAD * PAD + PAD) * 4

    mlp_flops = 2 * nL * np_ * PAD * PAD
    prop_flops = 2 * k * np_ * np_ * PAD

    kern_kw = dict(alpha=float(alpha), k=int(k),
                   layers_per_branch=layers_per_branch,
                   branch_weights=(float(a1), float(a2), float(a3)),
                   prop_dtype=prop_dtype)

    fused_need = (np_ * np_ * itemsize            # resident A_hat
                  + 5 * np_ * PAD * 4             # f1..f3, h0/h, out
                  + param_bytes)

    if (not force_streamed) and fused_need <= budget:
        # -------- resident-A fully-fused path (single DMA of A_hat) --------
        out_padded = pl.pallas_call(
            functools.partial(_appnp_fused_kernel, **kern_kw),
            out_shape=jax.ShapeDtypeStruct((np_, PAD), jnp.float32),
            in_specs=[_VMEM] * 6,
            out_specs=_VMEM,
            compiler_params=pltpu.CompilerParams(
                vmem_limit_bytes=min(budget, max(2 * fused_need, 8 << 20))),
            cost_estimate=pl.CostEstimate(
                flops=int(mlp_flops + prop_flops), transcendentals=0,
                bytes_accessed=int(fused_need)),
        )(a_hat, f1p, f2p, f3p, ws, bs)
    else:
        # -------- streamed large-N path: A_hat re-read from HBM each step --------
        row_block = max(8, (row_block // 8) * 8)
        candidates = [d for d in (2048, 1024, 512, 256, 128, 64, 32, 16, 8)
                      if np_ % d == 0 and d <= row_block]
        if not candidates:
            candidates = [8]

        def _stream_need(tm):
            return (2 * tm * np_ * itemsize       # double-buffered A_hat row slab
                    + 2 * 4 * tm * PAD * 4        # double-buffered feature/output tiles
                    + 3 * np_ * PAD * 4           # h0 + h ping-pong scratch
                    + param_bytes)

        tm = next((d for d in candidates if _stream_need(d) <= budget), candidates[-1])
        n_blocks = np_ // tm
        grid = (k + 1, n_blocks)

        out_padded = pl.pallas_call(
            functools.partial(_appnp_stream_kernel, tm=tm, **kern_kw),
            out_shape=jax.ShapeDtypeStruct((np_, PAD), jnp.float32),
            grid_spec=pltpu.PrefetchScalarGridSpec(
                num_scalar_prefetch=0,
                grid=grid,
                in_specs=[
                    pl.BlockSpec((tm, np_), lambda s, i: (i, 0)),      # A_hat row tile
                    pl.BlockSpec((tm, PAD), lambda s, i: (i, 0)),      # f1 rows
                    pl.BlockSpec((tm, PAD), lambda s, i: (i, 0)),      # f2 rows
                    pl.BlockSpec((tm, PAD), lambda s, i: (i, 0)),      # f3 rows
                    pl.BlockSpec((nL, PAD, PAD), lambda s, i: (0, 0, 0)),  # weights (resident)
                    pl.BlockSpec((nL, 1, PAD), lambda s, i: (0, 0, 0)),    # biases  (resident)
                ],
                out_specs=pl.BlockSpec((tm, PAD), lambda s, i: (i, 0)),
                scratch_shapes=[
                    pltpu.VMEM((np_, PAD), jnp.float32),       # combined h0
                    pltpu.VMEM((2, np_, PAD), jnp.float32),    # h ping-pong
                ],
            ),
            compiler_params=pltpu.CompilerParams(
                dimension_semantics=("arbitrary", "arbitrary"),
                vmem_limit_bytes=min(budget, max(2 * _stream_need(tm), 8 << 20))),
            cost_estimate=pl.CostEstimate(
                flops=int(mlp_flops + prop_flops), transcendentals=0,
                bytes_accessed=int((k + 1) * np_ * np_ * itemsize
                                   + (k + 4) * np_ * PAD * 4 + param_bytes)),
        )(a_hat, f1p, f2p, f3p, ws, bs)

    return out_padded[:n, :n_classes]


# ---------------------------------------------------------------------------
# Deterministic parameter / graph construction
# ---------------------------------------------------------------------------
def init_linear(key, fan_in, fan_out):
    """torch.nn.Linear reset_parameters: U(-1/sqrt(fan_in), 1/sqrt(fan_in))."""
    kw, kb = jax.random.split(key)
    bound = 1.0 / jnp.sqrt(jnp.float32(fan_in))
    w = jax.random.uniform(kw, (fan_in, fan_out), jnp.float32, -bound, bound)
    b = jax.random.uniform(kb, (1, fan_out), jnp.float32, -bound, bound)
    return w, b


def build_branch_params(key, in_feats, hiddens, n_classes):
    dims = [in_feats] + list(hiddens) + [n_classes]
    keys = jax.random.split(key, len(dims) - 1)
    return [init_linear(kk, dims[i], dims[i + 1]) for i, kk in enumerate(keys)]


def build_graph(key, n_nodes):
    """Symmetric random graph with self-loops; norm = deg^{-1/2}."""
    a = (jax.random.uniform(key, (n_nodes, n_nodes)) < 0.1).astype(jnp.float32)
    a = jnp.maximum(a, a.T)
    a = jnp.maximum(a, jnp.eye(n_nodes, dtype=jnp.float32))
    deg = a.sum(axis=1, keepdims=True)
    norm = 1.0 / jnp.sqrt(deg)
    return a, norm


# ---------------------------------------------------------------------------
# Pure-JAX reference (original, un-folded math) for a silent sanity check
# ---------------------------------------------------------------------------
def appnp_reference(params, adj, norm, f1, f2, f3, *, alpha, k, a1, a2, a3):
    outs = []
    for feats, layers in zip((f1, f2, f3), params):
        h = feats
        for (w, b) in layers[:-1]:
            h = jnp.maximum(h @ w + b, 0.0)
        w, b = layers[-1]
        h = h @ w + b
        h0 = h
        for _ in range(k):
            h = h * norm
            h = adj @ h
            h = h * norm
            h = h * (1.0 - alpha) + h0 * alpha
        outs.append(h)
    return a1 * outs[0] + a2 * outs[1] + a3 * outs[2]


if __name__ == "__main__":
    key = jax.random.PRNGKey(0)
    (k_g, k_f1, k_f2, k_f3, k_p1, k_p2, k_p3) = jax.random.split(key, 7)

    # Small, forward-consistent sizes.
    N = 64                               # graph nodes
    in_feats1, in_feats2, in_feats3 = 8, 16, 24
    hiddens = [32, 32]
    n_classes = 16
    alpha, K = 0.1, 4
    alpha1, alpha2, alpha3 = 0.5, 0.3, 0.2

    adj, norm = build_graph(k_g, N)
    f1 = jax.random.normal(k_f1, (N, in_feats1), jnp.float32)
    f2 = jax.random.normal(k_f2, (N, in_feats2), jnp.float32)
    f3 = jax.random.normal(k_f3, (N, in_feats3), jnp.float32)

    params = (
        build_branch_params(k_p1, in_feats1, hiddens, n_classes),
        build_branch_params(k_p2, in_feats2, hiddens, n_classes),
        build_branch_params(k_p3, in_feats3, hiddens, n_classes),
    )

    ref = appnp_reference(
        params, adj, norm, f1, f2, f3,
        alpha=alpha, k=K, a1=alpha1, a2=alpha2, a3=alpha3,
    )

    # 1) Fused resident-A path (f32, strict check against the un-folded reference).
    out = appnp_forward(
        params, adj, norm, f1, f2, f3,
        alpha=alpha, k=K, a1=alpha1, a2=alpha2, a3=alpha3, n_classes=n_classes,
    )
    out = jax.block_until_ready(out)
    assert out.shape == (N, n_classes)
    assert jnp.allclose(out, ref, atol=1e-4, rtol=1e-4)

    # 2) Streamed large-N path, forced at toy size (row_block=64 -> 2 row blocks).
    out_s = appnp_forward(
        params, adj, norm, f1, f2, f3,
        alpha=alpha, k=K, a1=alpha1, a2=alpha2, a3=alpha3, n_classes=n_classes,
        force_streamed=True, row_block=64,
    )
    out_s = jax.block_until_ready(out_s)
    assert jnp.allclose(out_s, ref, atol=1e-4, rtol=1e-4)

    # 3) bf16 propagation operator (v6e/v7x MXU fast path); loose tolerance by design.
    out_bf16 = appnp_forward(
        params, adj, norm, f1, f2, f3,
        alpha=alpha, k=K, a1=alpha1, a2=alpha2, a3=alpha3, n_classes=n_classes,
        prop_dtype=jnp.bfloat16,
    )
    out_bf16 = jax.block_until_ready(out_bf16)
    assert jnp.allclose(out_bf16, ref, atol=1e-1, rtol=1e-1)

    print("KERNEL_OK")
</pallas_src>

<mosaic_0001>
module attributes {stable_mosaic.version = 11 : i64} {
  func.func @_appnp_fused_kernel(%arg0: memref<128x128xf32, #tpu.memory_space<vmem>>, %arg1: memref<128x128xf32, #tpu.memory_space<vmem>>, %arg2: memref<128x128xf32, #tpu.memory_space<vmem>>, %arg3: memref<128x128xf32, #tpu.memory_space<vmem>>, %arg4: memref<9x128x128xf32, #tpu.memory_space<vmem>>, %arg5: memref<9x1x128xf32, #tpu.memory_space<vmem>>, %arg6: memref<128x128xf32, #tpu.memory_space<vmem>>) attributes {dimension_semantics = [], scalar_prefetch = 0 : i64, scratch_operands = 0 : i64, tpu.core_type = #tpu.core_type<tc>} {
    %c0 = arith.constant 0 : index
    %c0_0 = arith.constant 0 : index
    %0 = vector.load %arg1[%c0, %c0_0] : memref<128x128xf32, #tpu.memory_space<vmem>>, vector<128x128xf32>
    %c0_1 = arith.constant 0 : index
    %c0_2 = arith.constant 0 : index
    %c0_3 = arith.constant 0 : index
    %1 = vector.load %arg4[%c0_1, %c0_2, %c0_3] : memref<9x128x128xf32, #tpu.memory_space<vmem>>, vector<1x128x128xf32>
    %2 = vector.shape_cast %1 : vector<1x128x128xf32> to vector<128x128xf32>
    %cst = arith.constant dense<0.000000e+00> : vector<128x128xf32>
    %3 = tpu.matmul %0, %2, %cst {dimension_numbers = #tpu.dot_dimension_numbers<[1], [0], [0], [1], [0, 0, 1, 1], [], []>} : vector<128x128xf32>, vector<128x128xf32>, vector<128x128xf32> -> vector<128x128xf32>
    %c0_4 = arith.constant 0 : index
    %c0_5 = arith.constant 0 : index
    %c0_6 = arith.constant 0 : index
    %4 = vector.load %arg5[%c0_4, %c0_5, %c0_6] : memref<9x1x128xf32, #tpu.memory_space<vmem>>, vector<1x1x128xf32>
    %5 = vector.shape_cast %4 : vector<1x1x128xf32> to vector<1x128xf32>
    %6 = vector.broadcast %5 : vector<1x128xf32> to vector<128x128xf32>
    %7 = arith.addf %3, %6 : vector<128x128xf32>
    %cst_7 = arith.constant 0.000000e+00 : f32
    %8 = vector.broadcast %cst_7 : f32 to vector<128x128xf32>
    %9 = arith.maximumf %7, %8 : vector<128x128xf32>
    %c1 = arith.constant 1 : index
    %c0_8 = arith.constant 0 : index
    %c0_9 = arith.constant 0 : index
    %10 = vector.load %arg4[%c1, %c0_8, %c0_9] : memref<9x128x128xf32, #tpu.memory_space<vmem>>, vector<1x128x128xf32>
    %11 = vector.shape_cast %10 : vector<1x128x128xf32> to vector<128x128xf32>
    %cst_10 = arith.constant dense<0.000000e+00> : vector<128x128xf32>
    %12 = tpu.matmul %9, %11, %cst_10 {dimension_numbers = #tpu.dot_dimension_numbers<[1], [0], [0], [1], [0, 0, 1, 1], [], []>} : vector<128x128xf32>, vector<128x128xf32>, vector<128x128xf32> -> vector<128x128xf32>
    %c1_11 = arith.constant 1 : index
    %c0_12 = arith.constant 0 : index
    %c0_13 = arith.constant 0 : index
    %13 = vector.load %arg5[%c1_11, %c0_12, %c0_13] : memref<9x1x128xf32, #tpu.memory_space<vmem>>, vector<1x1x128xf32>
    %14 = vector.shape_cast %13 : vector<1x1x128xf32> to vector<1x128xf32>
    %15 = vector.broadcast %14 : vector<1x128xf32> to vector<128x128xf32>
    %16 = arith.addf %12, %15 : vector<128x128xf32>
    %cst_14 = arith.constant 0.000000e+00 : f32
    %17 = vector.broadcast %cst_14 : f32 to vector<128x128xf32>
    %18 = arith.maximumf %16, %17 : vector<128x128xf32>
    %c2 = arith.constant 2 : index
    %c0_15 = arith.constant 0 : index
    %c0_16 = arith.constant 0 : index
    %19 = vector.load %arg4[%c2, %c0_15, %c0_16] : memref<9x128x128xf32, #tpu.memory_space<vmem>>, vector<1x128x128xf32>
    %20 = vector.shape_cast %19 : vector<1x128x128xf32> to vector<128x128xf32>
    %cst_17 = arith.constant dense<0.000000e+00> : vector<128x128xf32>
    %21 = tpu.matmul %18, %20, %cst_17 {dimension_numbers = #tpu.dot_dimension_numbers<[1], [0], [0], [1], [0, 0, 1, 1], [], []>} : vector<128x128xf32>, vector<128x128xf32>, vector<128x128xf32> -> vector<128x128xf32>
    %c2_18 = arith.constant 2 : index
    %c0_19 = arith.constant 0 : index
    %c0_20 = arith.constant 0 : index
    %22 = vector.load %arg5[%c2_18, %c0_19, %c0_20] : memref<9x1x128xf32, #tpu.memory_space<vmem>>, vector<1x1x128xf32>
    %23 = vector.shape_cast %22 : vector<1x1x128xf32> to vector<1x128xf32>
    %24 = vector.broadcast %23 : vector<1x128xf32> to vector<128x128xf32>
    %25 = arith.addf %21, %24 : vector<128x128xf32>
    %cst_21 = arith.constant 5.000000e-01 : f32
    %26 = vector.broadcast %cst_21 : f32 to vector<128x128xf32>
    %27 = arith.mulf %26, %25 : vector<128x128xf32>
    %c0_22 = arith.constant 0 : index
    %c0_23 = arith.constant 0 : index
    %28 = vector.load %arg2[%c0_22, %c0_23] : memref<128x128xf32, #tpu.memory_space<vmem>>, vector<128x128xf32>
    %c3 = arith.constant 3 : index
    %c0_24 = arith.constant 0 : index
    %c0_25 = arith.constant 0 : index
    %29 = vector.load %arg4[%c3, %c0_24, %c0_25] : memref<9x128x128xf32, #tpu.memory_space<vmem>>, vector<1x128x128xf32>
    %30 = vector.shape_cast %29 : vector<1x128x128xf32> to vector<128x128xf32>
    %cst_26 = arith.constant dense<0.000000e+00> : vector<128x128xf32>
    %31 = tpu.matmul %28, %30, %cst_26 {dimension_numbers = #tpu.dot_dimension_numbers<[1], [0], [0], [1], [0, 0, 1, 1], [], []>} : vector<128x128xf32>, vector<128x128xf32>, vector<128x128xf32> -> vector<128x128xf32>
    %c3_27 = arith.constant 3 : index
    %c0_28 = arith.constant 0 : index
    %c0_29 = arith.constant 0 : index
    %32 = vector.load %arg5[%c3_27, %c0_28, %c0_29] : memref<9x1x128xf32, #tpu.memory_space<vmem>>, vector<1x1x128xf32>
    %33 = vector.shape_cast %32 : vector<1x1x128xf32> to vector<1x128xf32>
    %34 = vector.broadcast %33 : vector<1x128xf32> to vector<128x128xf32>
    %35 = arith.addf %31, %34 : vector<128x128xf32>
    %cst_30 = arith.constant 0.000000e+00 : f32
    %36 = vector.broadcast %cst_30 : f32 to vector<128x128xf32>
    %37 = arith.maximumf %35, %36 : vector<128x128xf32>
    %c4 = arith.constant 4 : index
    %c0_31 = arith.constant 0 : index
    %c0_32 = arith.constant 0 : index
    %38 = vector.load %arg4[%c4, %c0_31, %c0_32] : memref<9x128x128xf32, #tpu.memory_space<vmem>>, vector<1x128x128xf32>
    %39 = vector.shape_cast %38 : vector<1x128x128xf32> to vector<128x128xf32>
    %cst_33 = arith.constant dense<0.000000e+00> : vector<128x128xf32>
    %40 = tpu.matmul %37, %39, %cst_33 {dimension_numbers = #tpu.dot_dimension_numbers<[1], [0], [0], [1], [0, 0, 1, 1], [], []>} : vector<128x128xf32>, vector<128x128xf32>, vector<128x128xf32> -> vector<128x128xf32>
    %c4_34 = arith.constant 4 : index
    %c0_35 = arith.constant 0 : index
    %c0_36 = arith.constant 0 : index
    %41 = vector.load %arg5[%c4_34, %c0_35, %c0_36] : memref<9x1x128xf32, #tpu.memory_space<vmem>>, vector<1x1x128xf32>
    %42 = vector.shape_cast %41 : vector<1x1x128xf32> to vector<1x128xf32>
    %43 = vector.broadcast %42 : vector<1x128xf32> to vector<128x128xf32>
    %44 = arith.addf %40, %43 : vector<128x128xf32>
    %cst_37 = arith.constant 0.000000e+00 : f32
    %45 = vector.broadcast %cst_37 : f32 to vector<128x128xf32>
    %46 = arith.maximumf %44, %45 : vector<128x128xf32>
    %c5 = arith.constant 5 : index
    %c0_38 = arith.constant 0 : index
    %c0_39 = arith.constant 0 : index
    %47 = vector.load %arg4[%c5, %c0_38, %c0_39] : memref<9x128x128xf32, #tpu.memory_space<vmem>>, vector<1x128x128xf32>
    %48 = vector.shape_cast %47 : vector<1x128x128xf32> to vector<128x128xf32>
    %cst_40 = arith.constant dense<0.000000e+00> : vector<128x128xf32>
    %49 = tpu.matmul %46, %48, %cst_40 {dimension_numbers = #tpu.dot_dimension_numbers<[1], [0], [0], [1], [0, 0, 1, 1], [], []>} : vector<128x128xf32>, vector<128x128xf32>, vector<128x128xf32> -> vector<128x128xf32>
    %c5_41 = arith.constant 5 : index
    %c0_42 = arith.constant 0 : index
    %c0_43 = arith.constant 0 : index
    %50 = vector.load %arg5[%c5_41, %c0_42, %c0_43] : memref<9x1x128xf32, #tpu.memory_space<vmem>>, vector<1x1x128xf32>
    %51 = vector.shape_cast %50 : vector<1x1x128xf32> to vector<1x128xf32>
    %52 = vector.broadcast %51 : vector<1x128xf32> to vector<128x128xf32>
    %53 = arith.addf %49, %52 : vector<128x128xf32>
    %cst_44 = arith.constant 3.000000e-01 : f32
    %54 = vector.broadcast %cst_44 : f32 to vector<128x128xf32>
    %55 = arith.mulf %54, %53 : vector<128x128xf32>
    %56 = arith.addf %27, %55 : vector<128x128xf32>
    %c0_45 = arith.constant 0 : index
    %c0_46 = arith.constant 0 : index
    %57 = vector.load %arg3[%c0_45, %c0_46] : memref<128x128xf32, #tpu.memory_space<vmem>>, vector<128x128xf32>
    %c6 = arith.constant 6 : index
    %c0_47 = arith.constant 0 : index
    %c0_48 = arith.constant 0 : index
    %58 = vector.load %arg4[%c6, %c0_47, %c0_48] : memref<9x128x128xf32, #tpu.memory_space<vmem>>, vector<1x128x128xf32>
    %59 = vector.shape_cast %58 : vector<1x128x128xf32> to vector<128x128xf32>
    %cst_49 = arith.constant dense<0.000000e+00> : vector<128x128xf32>
    %60 = tpu.matmul %57, %59, %cst_49 {dimension_numbers = #tpu.dot_dimension_numbers<[1], [0], [0], [1], [0, 0, 1, 1], [], []>} : vector<128x128xf32>, vector<128x128xf32>, vector<128x128xf32> -> vector<128x128xf32>
    %c6_50 = arith.constant 6 : index
    %c0_51 = arith.constant 0 : index
    %c0_52 = arith.constant 0 : index
    %61 = vector.load %arg5[%c6_50, %c0_51, %c0_52] : memref<9x1x128xf32, #tpu.memory_space<vmem>>, vector<1x1x128xf32>
    %62 = vector.shape_cast %61 : vector<1x1x128xf32> to vector<1x128xf32>
    %63 = vector.broadcast %62 : vector<1x128xf32> to vector<128x128xf32>
    %64 = arith.addf %60, %63 : vector<128x128xf32>
    %cst_53 = arith.constant 0.000000e+00 : f32
    %65 = vector.broadcast %cst_53 : f32 to vector<128x128xf32>
    %66 = arith.maximumf %64, %65 : vector<128x128xf32>
    %c7 = arith.constant 7 : index
    %c0_54 = arith.constant 0 : index
    %c0_55 = arith.constant 0 : index
    %67 = vector.load %arg4[%c7, %c0_54, %c0_55] : memref<9x128x128xf32, #tpu.memory_space<vmem>>, vector<1x128x128xf32>
    %68 = vector.shape_cast %67 : vector<1x128x128xf32> to vector<128x128xf32>
    %cst_56 = arith.constant dense<0.000000e+00> : vector<128x128xf32>
    %69 = tpu.matmul %66, %68, %cst_56 {dimension_numbers = #tpu.dot_dimension_numbers<[1], [0], [0], [1], [0, 0, 1, 1], [], []>} : vector<128x128xf32>, vector<128x128xf32>, vector<128x128xf32> -> vector<128x128xf32>
    %c7_57 = arith.constant 7 : index
    %c0_58 = arith.constant 0 : index
    %c0_59 = arith.constant 0 : index
    %70 = vector.load %arg5[%c7_57, %c0_58, %c0_59] : memref<9x1x128xf32, #tpu.memory_space<vmem>>, vector<1x1x128xf32>
    %71 = vector.shape_cast %70 : vector<1x1x128xf32> to vector<1x128xf32>
    %72 = vector.broadcast %71 : vector<1x128xf32> to vector<128x128xf32>
    %73 = arith.addf %69, %72 : vector<128x128xf32>
    %cst_60 = arith.constant 0.000000e+00 : f32
    %74 = vector.broadcast %cst_60 : f32 to vector<128x128xf32>
    %75 = arith.maximumf %73, %74 : vector<128x128xf32>
    %c8 = arith.constant 8 : index
    %c0_61 = arith.constant 0 : index
    %c0_62 = arith.constant 0 : index
    %76 = vector.load %arg4[%c8, %c0_61, %c0_62] : memref<9x128x128xf32, #tpu.memory_space<vmem>>, vector<1x128x128xf32>
    %77 = vector.shape_cast %76 : vector<1x128x128xf32> to vector<128x128xf32>
    %cst_63 = arith.constant dense<0.000000e+00> : vector<128x128xf32>
    %78 = tpu.matmul %75, %77, %cst_63 {dimension_numbers = #tpu.dot_dimension_numbers<[1], [0], [0], [1], [0, 0, 1, 1], [], []>} : vector<128x128xf32>, vector<128x128xf32>, vector<128x128xf32> -> vector<128x128xf32>
    %c8_64 = arith.constant 8 : index
    %c0_65 = arith.constant 0 : index
    %c0_66 = arith.constant 0 : index
    %79 = vector.load %arg5[%c8_64, %c0_65, %c0_66] : memref<9x1x128xf32, #tpu.memory_space<vmem>>, vector<1x1x128xf32>
    %80 = vector.shape_cast %79 : vector<1x1x128xf32> to vector<1x128xf32>
    %81 = vector.broadcast %80 : vector<1x128xf32> to vector<128x128xf32>
    %82 = arith.addf %78, %81 : vector<128x128xf32>
    %cst_67 = arith.constant 2.000000e-01 : f32
    %83 = vector.broadcast %cst_67 : f32 to vector<128x128xf32>
    %84 = arith.mulf %83, %82 : vector<128x128xf32>
    %85 = arith.addf %56, %84 : vector<128x128xf32>
    %c0_68 = arith.constant 0 : index
    %c0_69 = arith.constant 0 : index
    %86 = vector.load %arg0[%c0_68, %c0_69] : memref<128x128xf32, #tpu.memory_space<vmem>>, vector<128x128xf32>
    %cst_70 = arith.constant 1.000000e-01 : f32
    %87 = vector.broadcast %cst_70 : f32 to vector<128x128xf32>
    %88 = arith.mulf %87, %85 : vector<128x128xf32>
    %cst_71 = arith.constant dense<0.000000e+00> : vector<128x128xf32>
    %89 = tpu.matmul %86, %85, %cst_71 {dimension_numbers = #tpu.dot_dimension_numbers<[1], [0], [0], [1], [0, 0, 1, 1], [], []>} : vector<128x128xf32>, vector<128x128xf32>, vector<128x128xf32> -> vector<128x128xf32>
    %90 = arith.addf %89, %88 : vector<128x128xf32>
    %cst_72 = arith.constant dense<0.000000e+00> : vector<128x128xf32>
    %91 = tpu.matmul %86, %90, %cst_72 {dimension_numbers = #tpu.dot_dimension_numbers<[1], [0], [0], [1], [0, 0, 1, 1], [], []>} : vector<128x128xf32>, vector<128x128xf32>, vector<128x128xf32> -> vector<128x128xf32>
    %92 = arith.addf %91, %88 : vector<128x128xf32>
    %cst_73 = arith.constant dense<0.000000e+00> : vector<128x128xf32>
    %93 = tpu.matmul %86, %92, %cst_73 {dimension_numbers = #tpu.dot_dimension_numbers<[1], [0], [0], [1], [0, 0, 1, 1], [], []>} : vector<128x128xf32>, vector<128x128xf32>, vector<128x128xf32> -> vector<128x128xf32>
    %94 = arith.addf %93, %88 : vector<128x128xf32>
    %cst_74 = arith.constant dense<0.000000e+00> : vector<128x128xf32>
    %95 = tpu.matmul %86, %94, %cst_74 {dimension_numbers = #tpu.dot_dimension_numbers<[1], [0], [0], [1], [0, 0, 1, 1], [], []>} : vector<128x128xf32>, vector<128x128xf32>, vector<128x128xf32> -> vector<128x128xf32>
    %96 = arith.addf %95, %88 : vector<128x128xf32>
    %c0_75 = arith.constant 0 : index
    %c0_76 = arith.constant 0 : index
    %97 = vector.load %arg6[%c0_75, %c0_76] : memref<128x128xf32, #tpu.memory_space<vmem>>, vector<128x128xf32>
    tpu.vector_store %arg6[%c0_75, %c0_76], %96 {strides = array<i32>} : memref<128x128xf32, #tpu.memory_space<vmem>>, vector<128x128xf32>,
    return
  }
}

</mosaic_0001>

<bundles_post_ra>
// kernel: tpu_custom_call.1
= control target key start
LH: loop header
LB: loop body
LE: loop exit
PB: predicated region body
PF: predicated region fallthrough
CT: control target
= control target key end

     0   :  { %11 = vsyncpa [#allocation3], 0  ;;  %s4920_s0 = inlined_call_operand.hbm [shape: f32[128,128], index: 0, kind: input, shape index: {}]   ;;  %s4921_s1 = inlined_call_operand.hbm [shape: f32[128,128], index: 1, kind: input, shape index: {}]   ;;  %s4922_s2 = inlined_call_operand.hbm [shape: f32[128,128], index: 2, kind: input, shape index: {}]   ;;  %s4923_s3 = inlined_call_operand.hbm [shape: f32[128,128], index: 3, kind: input, shape index: {}]   ;;  %s4924_s4 = inlined_call_operand.hbm [shape: f32[9,128,128], index: 4, kind: input, shape index: {}]   ;;  %s4925_s5 = inlined_call_operand.vmem [shape: f32[9,1,128], index: 5, kind: input, shape index: {}]   ;;  %s4926_s6 = inlined_call_operand.hbm [shape: f32[128,128], index: 6, kind: output, shape index: {}]  }
   0x1   :  { %12 = vsyncpa [#allocation6], 0 }
   0x2   :  { %13 = vsyncpa [#allocation9], 0 }
   0x3   :  { %14 = vsyncpa [#allocation4], 0  ;;  %s4232_s21 = smov [#allocation5]   ;;  %s4233_s23 = smov [#allocation8]  }
   0x4   :  { %s32_s22 = sshll.u32 %s4232_s21, 4  ;;  %s56_s24 = sshll.u32 %s4233_s23, 4  ;;  %s33_s22 = int_to_ptr.vmem [resolvable:$true] %s32_s22  ;;  %s4275_s24 = int_to_ptr.vmem [resolvable:$true] %s56_s24 }
   0x5   :  { %s4092_s27 = scalar_lea.hbm %s4921_s1, 2048 }
   0x6   :  { %p4093_p0 = scmp.ne.s32.totalorder %s4921_s1, %s4092_s27  ;;  %p4096_p1 = scmp.lt.u32.totalorder %s4092_s27, %s4921_s1 }
   0x8   :  { %p4098_p2 = pnand %p4096_p1, %p4093_p0 }
   0xa   :  { %4101 = shalt.err (!%p4098_p2)
}
   0xb   :  { %s4102_s8 = scalar_lea.vmem %s33_s22, 2048  ;;  %p4107_p4 = scmp.lt.s32.totalorder %s33_s22, %s33_s22 }
   0xc   :  { %p4103_p3 = scmp.ne.s32.totalorder %s33_s22, %s4102_s8  ;;  %p4108_p5 = scmp.lt.s32.totalorder %s4102_s8, %s4102_s8 }
   0xe   :  { %p4109_p6 = por %p4108_p5, %p4107_p4 }
  0x10   :  { %p4110_p7 = pnand %p4109_p6, %p4103_p3 }
  0x12   :  { %4113 = shalt.err (!%p4110_p7)
}
  0x13   :  { %s4234_s9 = smov 128   ;;  %s4235_s10 = smov 8  }
  0x14   :  { %38 = dma.hbm_to_vmem [thread:$0]  %s4921_s1, 2048, %s33_s22, [#allocation6], %s4234_s9, %s4234_s9, %s4235_s10  }
  0x15   :  { %s4114_s15 = scalar_lea.hbm %s4923_s3, 2048 }
  0x16   :  { %p4115_p8 = scmp.ne.s32.totalorder %s4923_s3, %s4114_s15  ;;  %p4118_p9 = scmp.lt.u32.totalorder %s4114_s15, %s4923_s3 }
  0x18   :  { %p4120_p10 = pnand %p4118_p9, %p4115_p8 }
  0x1a   :  { %4123 = shalt.err (!%p4120_p10)
}
  0x1b   :  { %s4124_s20 = scalar_lea.vmem %s4275_s24, 2048  ;;  %p4129_p12 = scmp.lt.s32.totalorder %s4275_s24, %s4275_s24 }
  0x1c   :  { %p4125_p11 = scmp.ne.s32.totalorder %s4275_s24, %s4124_s20  ;;  %p4130_p13 = scmp.lt.s32.totalorder %s4124_s20, %s4124_s20 }
  0x1e   :  { %p4131_p0 = por %p4130_p13, %p4129_p12 }
  0x20   :  { %p4132_p1 = pnand %p4131_p0, %p4125_p11 }
  0x22   :  { %4135 = shalt.err (!%p4132_p1)
}
  0x23   :  { %62 = dma.hbm_to_vmem [thread:$0]  %s4923_s3, 2048, %s4275_s24, [#allocation9], %s4234_s9, %s4234_s9, %s4235_s10  }
  0x24   :  { %s4236_s22 = smov [#allocation2]   ;;  %s4237_s25 = smov [#allocation7]  }
  0x25   :  { %s20_s23 = sshll.u32 %s4236_s22, 4  ;;  %s44_s26 = sshll.u32 %s4237_s25, 4  ;;  %s21_s23 = int_to_ptr.vmem [resolvable:$true] %s20_s23  ;;  %s4312_s26 = int_to_ptr.vmem [resolvable:$true] %s44_s26 }
  0x26   :  { %s4136_s29 = scalar_lea.hbm %s4920_s0, 2048 }
  0x27   :  { %p4137_p2 = scmp.ne.s32.totalorder %s4920_s0, %s4136_s29  ;;  %p4140_p3 = scmp.lt.u32.totalorder %s4136_s29, %s4920_s0 }
  0x29   :  { %p4142_p4 = pnand %p4140_p3, %p4137_p2 }
  0x2b   :  { %4145 = shalt.err (!%p4142_p4)
}
  0x2c   :  { %s4146_s3 = scalar_lea.vmem %s21_s23, 2048  ;;  %p4151_p6 = scmp.lt.s32.totalorder %s21_s23, %s21_s23 }
  0x2d   :  { %p4147_p5 = scmp.ne.s32.totalorder %s21_s23, %s4146_s3  ;;  %p4152_p7 = scmp.lt.s32.totalorder %s4146_s3, %s4146_s3 }
  0x2f   :  { %p4153_p8 = por %p4152_p7, %p4151_p6 }
  0x31   :  { %p4154_p9 = pnand %p4153_p8, %p4147_p5 }
  0x33   :  { %4157 = shalt.err (!%p4154_p9)
}
  0x34   :  { %26 = dma.hbm_to_vmem [thread:$0]  %s4920_s0, 2048, %s21_s23, [#allocation3], %s4234_s9, %s4234_s9, %s4235_s10  }
  0x35   :  { %s4158_s15 = scalar_lea.hbm %s4922_s2, 2048 }
  0x36   :  { %p4159_p10 = scmp.ne.s32.totalorder %s4922_s2, %s4158_s15  ;;  %p4162_p11 = scmp.lt.u32.totalorder %s4158_s15, %s4922_s2 }
  0x38   :  { %p4164_p12 = pnand %p4162_p11, %p4159_p10 }
  0x3a   :  { %4167 = shalt.err (!%p4164_p12)
}
  0x3b   :  { %s4168_s20 = scalar_lea.vmem %s4312_s26, 2048  ;;  %p4173_p0 = scmp.lt.s32.totalorder %s4312_s26, %s4312_s26 }
  0x3c   :  { %p4169_p13 = scmp.ne.s32.totalorder %s4312_s26, %s4168_s20  ;;  %p4174_p1 = scmp.lt.s32.totalorder %s4168_s20, %s4168_s20 }
  0x3e   :  { %p4175_p2 = por %p4174_p1, %p4173_p0 }
  0x40   :  { %p4176_p3 = pnand %p4175_p2, %p4169_p13 }
  0x42   :  { %4179 = shalt.err (!%p4176_p3)
}
  0x43   :  { %50 = dma.hbm_to_vmem [thread:$0]  %s4922_s2, 2048, %s4312_s26, [#allocation6], %s4234_s9, %s4234_s9, %s4235_s10  }
  0x44   :  { %s4238_s21 = smov [#allocation10]   ;;  %s4180_s27 = scalar_lea.hbm %s4924_s4, 18432 }
  0x45   :  { %s68_s22 = sshll.u32 %s4238_s21, 4  ;;  %p4181_p4 = scmp.ne.s32.totalorder %s4924_s4, %s4180_s27  ;;  %s69_s22 = int_to_ptr.vmem [resolvable:$true] %s68_s22 }
  0x46   :  { %p4184_p5 = scmp.lt.u32.totalorder %s4180_s27, %s4924_s4 }
  0x48   :  { %p4186_p6 = pnand %p4184_p5, %p4181_p4 }
  0x4a   :  { %4189 = shalt.err (!%p4186_p6)
}
  0x4b   :  { %s4190_s8 = scalar_lea.vmem %s69_s22, 18432  ;;  %p4195_p8 = scmp.lt.s32.totalorder %s69_s22, %s69_s22 }
  0x4c   :  { %p4191_p7 = scmp.ne.s32.totalorder %s69_s22, %s4190_s8  ;;  %p4196_p9 = scmp.lt.s32.totalorder %s4190_s8, %s4190_s8 }
  0x4e   :  { %p4197_p10 = por %p4196_p9, %p4195_p8 }
  0x50   :  { %p4198_p11 = pnand %p4197_p10, %p4191_p7 }
  0x52   :  { %4201 = shalt.err (!%p4198_p11)
}
  0x53   :  { %74 = dma.hbm_to_vmem [thread:$0]  %s4924_s4, 18432, %s69_s22, [#allocation9], %s4234_s9, %s4234_s9, %s4235_s10  }
  0x54   :  { %4224 = dma.done.wait [#allocation3], 2048  }
  0x55   :  { %4225 = vsyncadd [#allocation3], 4294965248 }
  0x56   :  { %4226 = dma.done.wait [#allocation6], 4096  }
  0x57   :  { %4227 = vsyncadd [#allocation6], 4294963200 }
  0x58   :  { %4228 = dma.done.wait [#allocation9], 20480  }
  0x59   :  { %4229 = vsyncadd [#allocation9], 4294946816  ;;  %v108_v0 = vld [vmem:[#allocation10] sm:$0xff]  ;;  %v109_v1 = vld [vmem:[#allocation10 + $0x8] sm:$0xff] }
  0x5a   :  { %v110_v2 = vld [vmem:[#allocation10 + $0x10] sm:$0xff]  ;;  %v3652_v3 = vpack.c.bf16 %v109_v1, %v108_v0  ;;  %v111_v4 = vld [vmem:[#allocation10 + $0x18] sm:$0xff]  ;;  %v112_v6 = vld [vmem:[#allocation10 + $0x20] sm:$0xff] }
  0x5b   :  { %v3656_v5 = vpack.c.bf16 %v111_v4, %v110_v2  ;;  %v113_v7 = vld [vmem:[#allocation10 + $0x28] sm:$0xff]  ;;  %v92_v9 = vld [vmem:[#allocation5] sm:$0xff]  ;;  %v114_v10 = vld [vmem:[#allocation10 + $0x30] sm:$0xff] }
  0x5c   :  { %3653 = vmatprep.subr.bf16.mxu0 %v3652_v3  ;;  %v3660_v8 = vpack.c.bf16 %v113_v7, %v112_v6  ;;  %v115_v11 = vld [vmem:[#allocation10 + $0x38] sm:$0xff]  ;;  %2956 = vmatprep.mubr.f32.mxu0 %v92_v9  ;;  %v116_v13 = vld [vmem:[#allocation10 + $0x40] sm:$0xff]  ;;  %v117_v14 = vld [vmem:[#allocation10 + $0x48] sm:$0xff] }
  0x5d   :  { %3655 = vmatpush3.bf16.msra.mxu0 %v3652_v3  ;;  %v3664_v12 = vpack.c.bf16 %v115_v11, %v114_v10  ;;  %v293_v15 = vld [vmem:[#allocation10 + $0x80] sm:$0xff]  ;;  %v294_v16 = vld [vmem:[#allocation10 + $0x88] sm:$0xff]  ;;  %v295_v17 = vld [vmem:[#allocation10 + $0x90] sm:$0xff]  ;;  %v3668_v21 = vpack.c.bf16 %v117_v14, %v116_v13 }
  0x5e   :  { %3657 = vmatprep.subr.bf16.mxu0 %v3656_v5  ;;  %v296_v18 = vld [vmem:[#allocation10 + $0x98] sm:$0xff]  ;;  %v3684_v19 = vpack.c.bf16 %v294_v16, %v293_v15  ;;  %v297_v22 = vld [vmem:[#allocation10 + $0xa0] sm:$0xff]  ;;  %v298_v23 = vld [vmem:[#allocation10 + $0xa8] sm:$0xff] }
  0x5f   :  { %v3688_v20 = vpack.c.bf16 %v296_v18, %v295_v17  ;;  %v118_v24 = vld [vmem:[#allocation10 + $0x50] sm:$0xff]  ;;  %v119_v25 = vld [vmem:[#allocation10 + $0x58] sm:$0xff]  ;;  %v3692_v26 = vpack.c.bf16 %v298_v23, %v297_v22  ;;  %v120_v30 = vld [vmem:[#allocation10 + $0x60] sm:$0xff] }
  0x60   :  { %3685 = vmatprep.subr.bf16.mxu1 %v3684_v19  ;;  %v3672_v27 = vpack.c.bf16 %v119_v25, %v118_v24  ;;  %v299_v28 = vld [vmem:[#allocation10 + $0xb0] sm:$0xff]  ;;  %v300_v29 = vld [vmem:[#allocation10 + $0xb8] sm:$0xff]  ;;  %v121_v31 = vld [vmem:[#allocation10 + $0x68] sm:$0xff] }
  0x61   :  { %3659 = vmatpush3.bf16.msra.mxu0 %v3656_v5  ;;  %3687 = vmatpush3.bf16.msra.mxu1 %v3684_v19  ;;  %v3696_v32 = vpack.c.bf16 %v300_v29, %v299_v28  ;;  %v3676_v33 = vpack.c.bf16 %v121_v31, %v120_v30  ;;  %v301_v34 = vld [vmem:[#allocation10 + $0xc0] sm:$0xff]  ;;  %v302_v35 = vld [vmem:[#allocation10 + $0xc8] sm:$0xff]  ;;  %v122_v36 = vld [vmem:[#allocation10 + $0x70] sm:$0xff] }
  0x62   :  { %3661 = vmatprep.subr.bf16.mxu0 %v3660_v8  ;;  %3689 = vmatprep.subr.bf16.mxu1 %v3688_v20  ;;  %v123_v37 = vld [vmem:[#allocation10 + $0x78] sm:$0xff]  ;;  %v3700_v38 = vpack.c.bf16 %v302_v35, %v301_v34  ;;  %v303_v40 = vld [vmem:[#allocation10 + $0xd0] sm:$0xff]  ;;  %v305_v43 = vld [vmem:[#allocation10 + $0xe0] sm:$0xff] }
  0x63   :  { %v3680_v39 = vpack.c.bf16 %v123_v37, %v122_v36  ;;  %v304_v41 = vld [vmem:[#allocation10 + $0xd8] sm:$0xff]  ;;  %v306_v44 = vld [vmem:[#allocation10 + $0xe8] sm:$0xff]  ;;  %v94_v47 = vld [vmem:[#allocation5 + $0x10] sm:$0xff] }
  0x64   :  { %v3704_v42 = vpack.c.bf16 %v304_v41, %v303_v40  ;;  %v93_v45 = vld [vmem:[#allocation5 + $0x8] sm:$0xff]  ;;  %v3708_v46 = vpack.c.bf16 %v306_v44, %v305_v43  ;;  %v95_v48 = vld [vmem:[#allocation5 + $0x18] sm:$0xff]  ;;  %v96_v49 = vld [vmem:[#allocation5 + $0x20] sm:$0xff] }
  0x65   :  { %3663 = vmatpush3.bf16.msra.mxu0 %v3660_v8  ;;  %3691 = vmatpush3.bf16.msra.mxu1 %v3688_v20  ;;  %v97_v50 = vld [vmem:[#allocation5 + $0x28] sm:$0xff]  ;;  %v98_v51 = vld [vmem:[#allocation5 + $0x30] sm:$0xff]  ;;  %v99_v52 = vld [vmem:[#allocation5 + $0x38] sm:$0xff] }
  0x66   :  { %3665 = vmatprep.subr.bf16.mxu0 %v3664_v12  ;;  %3693 = vmatprep.subr.bf16.mxu1 %v3692_v26  ;;  %v100_v53 = vld [vmem:[#allocation5 + $0x40] sm:$0xff]  ;;  %v101_v54 = vld [vmem:[#allocation5 + $0x48] sm:$0xff]  ;;  %v102_v55 = vld [vmem:[#allocation5 + $0x50] sm:$0xff] }
  0x67   :  { %v103_v56 = vld [vmem:[#allocation5 + $0x58] sm:$0xff]  ;;  %v104_v57 = vld [vmem:[#allocation5 + $0x60] sm:$0xff]  ;;  %v105_v58 = vld [vmem:[#allocation5 + $0x68] sm:$0xff] }
  0x68   :  { %v106_v59 = vld [vmem:[#allocation5 + $0x70] sm:$0xff]  ;;  %v107_v60 = vld [vmem:[#allocation5 + $0x78] sm:$0xff]  ;;  %v681_v0 = vld [vmem:[#allocation10 + $0x180] sm:$0xff] }
  0x69   :  { %3667 = vmatpush3.bf16.msra.mxu0 %v3664_v12  ;;  %3695 = vmatpush3.bf16.msra.mxu1 %v3692_v26  ;;  %v307_v61 = vld [vmem:[#allocation10 + $0xf0] sm:$0xff]  ;;  %v308_v62 = vld [vmem:[#allocation10 + $0xf8] sm:$0xff]  ;;  %v682_v1 = vld [vmem:[#allocation10 + $0x188] sm:$0xff] }
  0x6a   :  { %3669 = vmatprep.subr.bf16.mxu0 %v3668_v21  ;;  %3697 = vmatprep.subr.bf16.mxu1 %v3696_v32  ;;  %v3712_v63 = vpack.c.bf16 %v308_v62, %v307_v61  ;;  %v3748_v2 = vpack.c.bf16 %v682_v1, %v681_v0  ;;  %v479_v3 = vld [vmem:[#allocation10 + $0x100] sm:$0xff]  ;;  %v480_v4 = vld [vmem:[#allocation10 + $0x108] sm:$0xff]  ;;  %v481_v5 = vld [vmem:[#allocation10 + $0x110] sm:$0xff] }
  0x6b   :  { %v3716_v6 = vpack.c.bf16 %v480_v4, %v479_v3  ;;  %v482_v7 = vld [vmem:[#allocation10 + $0x118] sm:$0xff]  ;;  %v483_v9 = vld [vmem:[#allocation10 + $0x120] sm:$0xff]  ;;  %v484_v10 = vld [vmem:[#allocation10 + $0x128] sm:$0xff] }
  0x6c   :  { %v3720_v8 = vpack.c.bf16 %v482_v7, %v481_v5  ;;  %v3724_v11 = vpack.c.bf16 %v484_v10, %v483_v9  ;;  %v485_v12 = vld [vmem:[#allocation10 + $0x130] sm:$0xff]  ;;  %v486_v13 = vld [vmem:[#allocation10 + $0x138] sm:$0xff]  ;;  %v487_v15 = vld [vmem:[#allocation10 + $0x140] sm:$0xff] }
  0x6d   :  { %3671 = vmatpush3.bf16.msra.mxu0 %v3668_v21  ;;  %3699 = vmatpush3.bf16.msra.mxu1 %v3696_v32  ;;  %v3728_v14 = vpack.c.bf16 %v486_v13, %v485_v12  ;;  %v488_v16 = vld [vmem:[#allocation10 + $0x148] sm:$0xff]  ;;  %v489_v18 = vld [vmem:[#allocation10 + $0x150] sm:$0xff]  ;;  %v490_v19 = vld [vmem:[#allocation10 + $0x158] sm:$0xff] }
  0x6e   :  { %3673 = vmatprep.subr.bf16.mxu0 %v3672_v27  ;;  %3701 = vmatprep.subr.bf16.mxu1 %v3700_v38  ;;  %v3732_v17 = vpack.c.bf16 %v488_v16, %v487_v15  ;;  %v3736_v20 = vpack.c.bf16 %v490_v19, %v489_v18  ;;  %v491_v21 = vld [vmem:[#allocation10 + $0x160] sm:$0xff]  ;;  %v492_v22 = vld [vmem:[#allocation10 + $0x168] sm:$0xff]  ;;  %v683_v29 = vld [vmem:[#allocation10 + $0x190] sm:$0xff] }
  0x6f   :  { %v3740_v23 = vpack.c.bf16 %v492_v22, %v491_v21  ;;  %v4367_v24 = vld [vmem:[%s4925_s5] ss:$0 sm:$0xff]  ;;  %v684_v30 = vld [vmem:[#allocation10 + $0x198] sm:$0xff]  ;;  %v691_v1 = vld [vmem:[#allocation10 + $0x1d0] sm:$0xff] }
  0x70   :  { %v3752_v36 = vpack.c.bf16 %v684_v30, %v683_v29  ;;  %v693_v10 = vld [vmem:[#allocation10 + $0x1e0] sm:$0xff]  ;;  %v695_v19 = vld [vmem:[#allocation10 + $0x1f0] sm:$0xff] }
  0x71   :  { %3675 = vmatpush3.bf16.msra.mxu0 %v3672_v27  ;;  %3703 = vmatpush3.bf16.msra.mxu1 %v3700_v38  ;;  %v685_v38 = vld [vmem:[#allocation10 + $0x1a0] sm:$0xff] }
  0x72   :  { %3677 = vmatprep.subr.bf16.mxu0 %v3676_v33  ;;  %3705 = vmatprep.subr.bf16.mxu1 %v3704_v42 }
  0x75   :  { %3679 = vmatpush3.bf16.msra.mxu0 %v3676_v33  ;;  %3707 = vmatpush3.bf16.msra.mxu1 %v3704_v42 }
  0x76   :  { %3681 = vmatprep.subr.bf16.mxu0 %v3680_v39  ;;  %3709 = vmatprep.subr.bf16.mxu1 %v3708_v46 }
  0x79   :  { %3683 = vmatpush3.bf16.msra.mxu0 %v3680_v39  ;;  %3711 = vmatpush3.bf16.msra.mxu1 %v3708_v46  ;;  %v686_v39 = vld [vmem:[#allocation10 + $0x1a8] sm:$0xff] }
  0x7a   :  { %3713 = vmatprep.subr.bf16.mxu1 %v3712_v63  ;;  %3717 = vmatprep.subr.bf16.mxu0 %v3716_v6 }
  0x7c   :  { %2957 = vmatmul.mubr.f32.vlgmr.msra.gmra.mrb[0].mxu0 %v93_v45  ;;  %v3756_v45 = vpack.c.bf16 %v686_v39, %v685_v38  ;;  %v672_v38 = vld [vmem:[#allocation7 + $0x40] sm:$0xff]  ;;  %v673_v39 = vld [vmem:[#allocation7 + $0x48] sm:$0xff] }
  0x7d   :  { %2959 = vmatprep.mubr.f32.mxu0 %v94_v47  ;;  %3715 = vmatpush3.bf16.msra.mxu1 %v3712_v63  ;;  %v687_v47 = vld [vmem:[#allocation10 + $0x1b0] sm:$0xff] }
  0x7e   :  { %3749 = vmatprep.subr.bf16.mxu1 %v3748_v2  ;;  %3719 = vmatpush3.bf16.msra.mxu0 %v3716_v6 }
  0x7f   :  { %3721 = vmatprep.subr.bf16.mxu0 %v3720_v8 }
  0x80   :  { %2960 = vmatmul.mubr.f32.gmra.mrb[2].mxu0 %v95_v48  ;;  %v688_v48 = vld [vmem:[#allocation10 + $0x1b8] sm:$0xff] }
  0x81   :  { %2962 = vmatprep.mubr.f32.mxu0 %v96_v49 }
  0x82   :  { %3723 = vmatpush3.bf16.msra.mxu0 %v3720_v8 }
  0x83   :  { %3725 = vmatprep.subr.bf16.mxu0 %v3724_v11 }
  0x84   :  { %2963 = vmatmul.mubr.f32.gmra.mrb[4].mxu0 %v97_v50 }
  0x85   :  { %2965 = vmatprep.mubr.f32.mxu0 %v98_v51 }
  0x86   :  { %3727 = vmatpush3.bf16.msra.mxu0 %v3724_v11  ;;  %v694_v11 = vld [vmem:[#allocation10 + $0x1e8] sm:$0xff] }
  0x87   :  { %3729 = vmatprep.subr.bf16.mxu0 %v3728_v14 }
  0x88   :  { %2966 = vmatmul.mubr.f32.gmra.mrb[6].mxu0 %v99_v52 }
  0x89   :  { %2968 = vmatprep.mubr.f32.mxu0 %v100_v53 }
  0x8a   :  { %3731 = vmatpush3.bf16.msra.mxu0 %v3728_v14 }
  0x8b   :  { %3733 = vmatprep.subr.bf16.mxu0 %v3732_v17 }
  0x8c   :  { %2969 = vmatmul.mubr.f32.gmra.mrb[8].mxu0 %v101_v54  ;;  %v3760_v54 = vpack.c.bf16 %v688_v48, %v687_v47  ;;  %v494_v47 = vld [vmem:[#allocation10 + $0x178] sm:$0xff] }
  0x8d   :  { %2971 = vmatprep.mubr.f32.mxu0 %v102_v55 }
  0x8e   :  { %3735 = vmatpush3.bf16.msra.mxu0 %v3732_v17  ;;  %v3772_v17 = vpack.c.bf16 %v694_v11, %v693_v10  ;;  %v873_v11 = vld [vmem:[#allocation10 + $0x230] sm:$0xff] }
  0x8f   :  { %3737 = vmatprep.subr.bf16.mxu0 %v3736_v20 }
  0x90   :  { %2972 = vmatmul.mubr.f32.gmra.mrb[10].mxu0 %v103_v56  ;;  %v689_v56 = vld [vmem:[#allocation10 + $0x1c0] sm:$0xff] }
  0x91   :  { %2974 = vmatprep.mubr.f32.mxu0 %v104_v57  ;;  %v690_v57 = vld [vmem:[#allocation10 + $0x1c8] sm:$0xff] }
  0x92   :  { %3739 = vmatpush3.bf16.msra.mxu0 %v3736_v20  ;;  %v3764_v63 = vpack.c.bf16 %v690_v57, %v689_v56  ;;  %v696_v20 = vld [vmem:[#allocation10 + $0x1f8] sm:$0xff]  ;;  %v869_v57 = vld [vmem:[#allocation10 + $0x210] sm:$0xff] }
  0x93   :  { %3741 = vmatprep.subr.bf16.mxu0 %v3740_v23 }
  0x94   :  { %2975 = vmatmul.mubr.f32.gmra.mrb[12].mxu0 %v105_v58 }
  0x95   :  { %2977 = vmatprep.mubr.f32.mxu0 %v106_v59 }
  0x96   :  { %3743 = vmatpush3.bf16.msra.mxu0 %v3740_v23 }
  0x98   :  { %2978 = vmatmul.mubr.f32.gmra.mrb[14].mxu0 %v107_v60 }
 0x14f   :  { %v2958_v25 = vpop.f32.mrb[0].mxu0 }
 0x150   :  { %v203_v26 = vadd.f32 %v2958_v25, %v4367_v24  ;;  %v197_v27 = vpop.f32.mrb[1].mxu0 }
 0x151   :  { %v198_v28 = vadd.f32 %v4367_v24, %v197_v27  ;;  %v3776_v27 = vpack.c.bf16 %v696_v20, %v695_v19  ;;  %v875_v20 = vld [vmem:[#allocation10 + $0x240] sm:$0xff] }
 0x152   :  { %v277_v33 = vmax.f32 %v203_v26, 0.0 }
 0x153   :  { %v2961_v31 = vpop.f32.mrb[2].mxu0  ;;  %v276_v32 = vmax.f32 %v198_v28, 0.0 }
 0x154   :  { %v213_v34 = vadd.f32 %v2961_v31, %v4367_v24  ;;  %v207_v35 = vpop.f32.mrb[3].mxu0  ;;  %v664_v31 = vld [vmem:[#allocation7] sm:$0xff] }
 0x155   :  { %v208_v37 = vadd.f32 %v4367_v24, %v207_v35  ;;  %3012 = vmatprep.mubr.f32.mxu1 %v276_v32  ;;  %v665_v32 = vld [vmem:[#allocation7 + $0x8] sm:$0xff]  ;;  %v668_v35 = vld [vmem:[#allocation7 + $0x20] sm:$0xff] }
 0x156   :  { %3013 = vmatmul.mubr.f32.vlgmr.msra.gmra.mrb[0].mxu1 %v277_v33  ;;  %v279_v42 = vmax.f32 %v213_v34, 0.0  ;;  %v666_v33 = vld [vmem:[#allocation7 + $0x10] sm:$0xff]  ;;  %v667_v34 = vld [vmem:[#allocation7 + $0x18] sm:$0xff] }
 0x157   :  { %v278_v40 = vmax.f32 %v208_v37, 0.0  ;;  %v2964_v41 = vpop.f32.mrb[4].mxu0  ;;  %3751 = vmatpush3.bf16.msra.mxu1 %v3748_v2  ;;  %v692_v2 = vld [vmem:[#allocation10 + $0x1d8] sm:$0xff] }
 0x158   :  { %v223_v43 = vadd.f32 %v2964_v41, %v4367_v24  ;;  %v217_v44 = vpop.f32.mrb[5].mxu0  ;;  %3753 = vmatprep.subr.bf16.mxu1 %v3752_v36  ;;  %v3768_v8 = vpack.c.bf16 %v692_v2, %v691_v1  ;;  %v671_v37 = vld [vmem:[#allocation7 + $0x38] sm:$0xff]  ;;  %v871_v2 = vld [vmem:[#allocation10 + $0x220] sm:$0xff] }
 0x159   :  { %v218_v46 = vadd.f32 %v4367_v24, %v217_v44  ;;  %3015 = vmatprep.mubr.f32.mxu1 %v278_v40  ;;  %v674_v40 = vld [vmem:[#allocation7 + $0x50] sm:$0xff]  ;;  %v675_v41 = vld [vmem:[#allocation7 + $0x58] sm:$0xff] }
 0x15a   :  { %3016 = vmatmul.mubr.f32.gmra.mrb[2].mxu1 %v279_v42  ;;  %v281_v51 = vmax.f32 %v223_v43, 0.0  ;;  %v676_v42 = vld [vmem:[#allocation7 + $0x60] sm:$0xff]  ;;  %v677_v43 = vld [vmem:[#allocation7 + $0x68] sm:$0xff]  ;;  %v678_v44 = vld [vmem:[#allocation7 + $0x70] sm:$0xff] }
 0x15b   :  { %v280_v49 = vmax.f32 %v218_v46, 0.0  ;;  %v2967_v50 = vpop.f32.mrb[6].mxu0  ;;  %3755 = vmatpush3.bf16.msra.mxu1 %v3752_v36  ;;  %v670_v36 = vld [vmem:[#allocation7 + $0x30] sm:$0xff] }
 0x15c   :  { %v233_v52 = vadd.f32 %v2967_v50, %v4367_v24  ;;  %v227_v53 = vpop.f32.mrb[7].mxu0  ;;  %3757 = vmatprep.subr.bf16.mxu1 %v3756_v45  ;;  %v493_v46 = vld [vmem:[#allocation10 + $0x170] sm:$0xff]  ;;  %v868_v50 = vld [vmem:[#allocation10 + $0x208] sm:$0xff] }
 0x15d   :  { %v228_v55 = vadd.f32 %v4367_v24, %v227_v53  ;;  %3018 = vmatprep.mubr.f32.mxu1 %v280_v49  ;;  %v3744_v48 = vpack.c.bf16 %v494_v47, %v493_v46  ;;  %v867_v49 = vld [vmem:[#allocation10 + $0x200] sm:$0xff]  ;;  %v881_v47 = vld [vmem:[#allocation10 + $0x270] sm:$0xff] }
 0x15e   :  { %3019 = vmatmul.mubr.f32.gmra.mrb[4].mxu1 %v281_v51  ;;  %v283_v60 = vmax.f32 %v233_v52, 0.0  ;;  %v3780_v51 = vpack.c.bf16 %v868_v50, %v867_v49  ;;  %v4388_v52 = vld [vmem:[%s4925_s5 + $0x1] ss:$0 sm:$0xff] }
 0x15f   :  { %v282_v58 = vmax.f32 %v228_v55, 0.0  ;;  %v2970_v59 = vpop.f32.mrb[8].mxu0  ;;  %3759 = vmatpush3.bf16.msra.mxu1 %v3756_v45  ;;  %v679_v45 = vld [vmem:[#allocation7 + $0x78] sm:$0xff]  ;;  %3745 = vmatprep.subr.bf16.mxu0 %v3744_v48 }
 0x160   :  { %v243_v61 = vadd.f32 %v2970_v59, %v4367_v24  ;;  %v237_v62 = vpop.f32.mrb[9].mxu0  ;;  %3761 = vmatprep.subr.bf16.mxu1 %v3760_v54  ;;  %3747 = vmatpush3.bf16.msra.mxu0 %v3744_v48  ;;  %v882_v48 = vld [vmem:[#allocation10 + $0x278] sm:$0xff] }
 0x161   :  { %v238_v0 = vadd.f32 %v4367_v24, %v237_v62  ;;  %3021 = vmatprep.mubr.f32.mxu1 %v282_v58  ;;  %3781 = vmatprep.subr.bf16.mxu0 %v3780_v51  ;;  %v870_v58 = vld [vmem:[#allocation10 + $0x218] sm:$0xff] }
 0x162   :  { %3022 = vmatmul.mubr.f32.gmra.mrb[6].mxu1 %v283_v60  ;;  %v285_v5 = vmax.f32 %v243_v61, 0.0 }
 0x163   :  { %v284_v3 = vmax.f32 %v238_v0, 0.0  ;;  %v2973_v4 = vpop.f32.mrb[10].mxu0  ;;  %3763 = vmatpush3.bf16.msra.mxu1 %v3760_v54  ;;  %v3784_v0 = vpack.c.bf16 %v870_v58, %v869_v57  ;;  %v4409_v57 = vld [vmem:[%s4925_s5 + $0x3] ss:$0 sm:$0xff] }
 0x164   :  { %v253_v6 = vadd.f32 %v2973_v4, %v4367_v24  ;;  %v247_v7 = vpop.f32.mrb[11].mxu0  ;;  %3765 = vmatprep.subr.bf16.mxu1 %v3764_v63  ;;  %v1271_v58 = vld [vmem:[#allocation10 + $0x300] sm:$0xff] }
 0x165   :  { %v248_v9 = vadd.f32 %v4367_v24, %v247_v7  ;;  %3024 = vmatprep.mubr.f32.mxu1 %v284_v3  ;;  %v872_v3 = vld [vmem:[#allocation10 + $0x228] sm:$0xff] }
 0x166   :  { %3025 = vmatmul.mubr.f32.gmra.mrb[8].mxu1 %v285_v5  ;;  %v287_v14 = vmax.f32 %v253_v6, 0.0 }
 0x167   :  { %v286_v12 = vmax.f32 %v248_v9, 0.0  ;;  %v2976_v13 = vpop.f32.mrb[12].mxu0  ;;  %3767 = vmatpush3.bf16.msra.mxu1 %v3764_v63  ;;  %v3788_v9 = vpack.c.bf16 %v872_v3, %v871_v2  ;;  %v1273_v2 = vld [vmem:[#allocation10 + $0x310] sm:$0xff]  ;;  %v1274_v3 = vld [vmem:[#allocation10 + $0x318] sm:$0xff] }
 0x168   :  { %v263_v15 = vadd.f32 %v2976_v13, %v4367_v24  ;;  %v257_v16 = vpop.f32.mrb[13].mxu0  ;;  %3769 = vmatprep.subr.bf16.mxu1 %v3768_v8 }
 0x169   :  { %v258_v18 = vadd.f32 %v4367_v24, %v257_v16  ;;  %3027 = vmatprep.mubr.f32.mxu1 %v286_v12  ;;  %v874_v12 = vld [vmem:[#allocation10 + $0x238] sm:$0xff] }
 0x16a   :  { %3028 = vmatmul.mubr.f32.gmra.mrb[10].mxu1 %v287_v14  ;;  %v289_v23 = vmax.f32 %v263_v15, 0.0 }
 0x16b   :  { %v288_v21 = vmax.f32 %v258_v18, 0.0  ;;  %v2979_v22 = vpop.f32.mrb[14].mxu0  ;;  %3771 = vmatpush3.bf16.msra.mxu1 %v3768_v8  ;;  %v3792_v18 = vpack.c.bf16 %v874_v12, %v873_v11  ;;  %v1275_v11 = vld [vmem:[#allocation10 + $0x320] sm:$0xff]  ;;  %v1276_v12 = vld [vmem:[#allocation10 + $0x328] sm:$0xff] }
 0x16c   :  { %v273_v25 = vadd.f32 %v2979_v22, %v4367_v24  ;;  %v267_v26 = vpop.f32.mrb[15].mxu0  ;;  %3773 = vmatprep.subr.bf16.mxu1 %v3772_v17 }
 0x16d   :  { %v268_v28 = vadd.f32 %v4367_v24, %v267_v26  ;;  %3030 = vmatprep.mubr.f32.mxu1 %v288_v21  ;;  %v669_v24 = vld [vmem:[#allocation7 + $0x28] sm:$0xff] }
 0x16e   :  { %3031 = vmatmul.mubr.f32.gmra.mrb[12].mxu1 %v289_v23  ;;  %v291_v30 = vmax.f32 %v273_v25, 0.0  ;;  %v876_v21 = vld [vmem:[#allocation10 + $0x248] sm:$0xff] }
 0x16f   :  { %v290_v29 = vmax.f32 %v268_v28, 0.0  ;;  %3775 = vmatpush3.bf16.msra.mxu1 %v3772_v17  ;;  %v3796_v28 = vpack.c.bf16 %v876_v21, %v875_v20  ;;  %v1277_v20 = vld [vmem:[#allocation10 + $0x330] sm:$0xff]  ;;  %v1278_v21 = vld [vmem:[#allocation10 + $0x338] sm:$0xff] }
 0x170   :  { %3777 = vmatprep.subr.bf16.mxu1 %v3776_v27 }
 0x171   :  { %3033 = vmatprep.mubr.f32.mxu1 %v290_v29 }
 0x172   :  { %3034 = vmatmul.mubr.f32.gmra.mrb[14].mxu1 %v291_v30  ;;  %v877_v30 = vld [vmem:[#allocation10 + $0x250] sm:$0xff] }
 0x173   :  { %3779 = vmatpush3.bf16.msra.mxu1 %v3776_v27  ;;  %3124 = vmatprep.mubr.f32.mxu1 %v664_v31  ;;  %v878_v31 = vld [vmem:[#allocation10 + $0x258] sm:$0xff] }
 0x176   :  { %3125 = vmatmul.mubr.f32.vlgmr.msra.gmra.mrb[16].mxu1 %v665_v32 }
 0x177   :  { %3127 = vmatprep.mubr.f32.mxu1 %v666_v33 }
 0x17a   :  { %3128 = vmatmul.mubr.f32.gmra.mrb[18].mxu1 %v667_v34 }
 0x17b   :  { %3130 = vmatprep.mubr.f32.mxu1 %v668_v35 }
 0x17e   :  { %3131 = vmatmul.mubr.f32.gmra.mrb[20].mxu1 %v669_v24 }
 0x17f   :  { %3133 = vmatprep.mubr.f32.mxu1 %v670_v36  ;;  %v3800_v36 = vpack.c.bf16 %v878_v31, %v877_v30  ;;  %v1279_v30 = vld [vmem:[#allocation10 + $0x340] sm:$0xff]  ;;  %v1280_v31 = vld [vmem:[#allocation10 + $0x348] sm:$0xff] }
 0x182   :  { %3134 = vmatmul.mubr.f32.gmra.mrb[22].mxu1 %v671_v37 }
 0x183   :  { %3136 = vmatprep.mubr.f32.mxu1 %v672_v38  ;;  %v879_v38 = vld [vmem:[#allocation10 + $0x260] sm:$0xff] }
 0x186   :  { %3137 = vmatmul.mubr.f32.gmra.mrb[24].mxu1 %v673_v39  ;;  %v880_v39 = vld [vmem:[#allocation10 + $0x268] sm:$0xff] }
 0x187   :  { %3139 = vmatprep.mubr.f32.mxu1 %v674_v40 }
 0x18a   :  { %3140 = vmatmul.mubr.f32.gmra.mrb[26].mxu1 %v675_v41 }
 0x18b   :  { %3142 = vmatprep.mubr.f32.mxu1 %v676_v42 }
 0x18e   :  { %3143 = vmatmul.mubr.f32.gmra.mrb[28].mxu1 %v677_v43 }
 0x18f   :  { %3145 = vmatprep.mubr.f32.mxu1 %v678_v44 }
 0x192   :  { %3146 = vmatmul.mubr.f32.gmra.mrb[30].mxu1 %v679_v45  ;;  %v3804_v45 = vpack.c.bf16 %v880_v39, %v879_v38  ;;  %v1281_v38 = vld [vmem:[#allocation10 + $0x350] sm:$0xff]  ;;  %v1282_v39 = vld [vmem:[#allocation10 + $0x358] sm:$0xff] }
 0x229   :  { %v3014_v53 = vpop.f32.mrb[0].mxu1 }
 0x22a   :  { %v389_v54 = vadd.f32 %v3014_v53, %v4388_v52  ;;  %v383_v55 = vpop.f32.mrb[1].mxu1 }
 0x22b   :  { %v384_v56 = vadd.f32 %v4388_v52, %v383_v55  ;;  %v3808_v55 = vpack.c.bf16 %v882_v48, %v881_v47  ;;  %v1283_v47 = vld [vmem:[#allocation10 + $0x360] sm:$0xff]  ;;  %v1284_v48 = vld [vmem:[#allocation10 + $0x368] sm:$0xff] }
 0x22c   :  { %v463_v61 = vmax.f32 %v389_v54, 0.0 }
 0x22d   :  { %v462_v59 = vmax.f32 %v384_v56, 0.0  ;;  %v3017_v60 = vpop.f32.mrb[2].mxu1 }
 0x22e   :  { %v399_v62 = vadd.f32 %v3017_v60, %v4388_v52  ;;  %v393_v63 = vpop.f32.mrb[3].mxu1 }
 0x22f   :  { %v394_v1 = vadd.f32 %v4388_v52, %v393_v63  ;;  %3068 = vmatprep.mubr.f32.mxu0 %v462_v59  ;;  %v1272_v59 = vld [vmem:[#allocation10 + $0x308] sm:$0xff] }
 0x230   :  { %3069 = vmatmul.mubr.f32.vlgmr.msra.gmra.mrb[16].mxu0 %v463_v61  ;;  %v465_v6 = vmax.f32 %v399_v62, 0.0 }
 0x231   :  { %v464_v4 = vmax.f32 %v394_v1, 0.0  ;;  %v3020_v5 = vpop.f32.mrb[4].mxu1  ;;  %3783 = vmatpush3.bf16.msra.mxu0 %v3780_v51  ;;  %v3844_v1 = vpack.c.bf16 %v1272_v59, %v1271_v58  ;;  %v1285_v58 = vld [vmem:[#allocation10 + $0x370] sm:$0xff]  ;;  %v1286_v59 = vld [vmem:[#allocation10 + $0x378] sm:$0xff] }
 0x232   :  { %v409_v7 = vadd.f32 %v3020_v5, %v4388_v52  ;;  %v403_v8 = vpop.f32.mrb[5].mxu1  ;;  %3785 = vmatprep.subr.bf16.mxu0 %v3784_v0 }
 0x233   :  { %v404_v10 = vadd.f32 %v4388_v52, %v403_v8  ;;  %3071 = vmatprep.mubr.f32.mxu0 %v464_v4 }
 0x234   :  { %3072 = vmatmul.mubr.f32.gmra.mrb[18].mxu0 %v465_v6  ;;  %v467_v15 = vmax.f32 %v409_v7, 0.0 }
 0x235   :  { %v466_v13 = vmax.f32 %v404_v10, 0.0  ;;  %v3023_v14 = vpop.f32.mrb[6].mxu1  ;;  %3787 = vmatpush3.bf16.msra.mxu0 %v3784_v0 }
 0x236   :  { %v419_v16 = vadd.f32 %v3023_v14, %v4388_v52  ;;  %v413_v17 = vpop.f32.mrb[7].mxu1  ;;  %3789 = vmatprep.subr.bf16.mxu0 %v3788_v9 }
 0x237   :  { %v414_v19 = vadd.f32 %v4388_v52, %v413_v17  ;;  %3074 = vmatprep.mubr.f32.mxu0 %v466_v13 }
 0x238   :  { %3075 = vmatmul.mubr.f32.gmra.mrb[20].mxu0 %v467_v15  ;;  %v469_v25 = vmax.f32 %v419_v16, 0.0 }
 0x239   :  { %v468_v22 = vmax.f32 %v414_v19, 0.0  ;;  %v3026_v23 = vpop.f32.mrb[8].mxu1  ;;  %3791 = vmatpush3.bf16.msra.mxu0 %v3788_v9  ;;  %v3848_v9 = vpack.c.bf16 %v1274_v3, %v1273_v2 }
 0x23a   :  { %v429_v26 = vadd.f32 %v3026_v23, %v4388_v52  ;;  %v423_v27 = vpop.f32.mrb[9].mxu1  ;;  %3793 = vmatprep.subr.bf16.mxu0 %v3792_v18 }
 0x23b   :  { %v424_v29 = vadd.f32 %v4388_v52, %v423_v27  ;;  %3077 = vmatprep.mubr.f32.mxu0 %v468_v22 }
 0x23c   :  { %3078 = vmatmul.mubr.f32.gmra.mrb[22].mxu0 %v469_v25  ;;  %v471_v34 = vmax.f32 %v429_v26, 0.0 }
 0x23d   :  { %v470_v32 = vmax.f32 %v424_v29, 0.0  ;;  %v3029_v33 = vpop.f32.mrb[10].mxu1  ;;  %3795 = vmatpush3.bf16.msra.mxu0 %v3792_v18  ;;  %v3852_v18 = vpack.c.bf16 %v1276_v12, %v1275_v11  ;;  %v1262_v11 = vld [vmem:[#allocation8 + $0x40] sm:$0xff]  ;;  %v1263_v12 = vld [vmem:[#allocation8 + $0x48] sm:$0xff] }
 0x23e   :  { %v439_v35 = vadd.f32 %v3029_v33, %v4388_v52  ;;  %v433_v24 = vpop.f32.mrb[11].mxu1  ;;  %3797 = vmatprep.subr.bf16.mxu0 %v3796_v28 }
 0x23f   :  { %v434_v37 = vadd.f32 %v4388_v52, %v433_v24  ;;  %3080 = vmatprep.mubr.f32.mxu0 %v470_v32 }
 0x240   :  { %3081 = vmatmul.mubr.f32.gmra.mrb[24].mxu0 %v471_v34  ;;  %v473_v42 = vmax.f32 %v439_v35, 0.0 }
 0x241   :  { %v472_v40 = vmax.f32 %v434_v37, 0.0  ;;  %v3032_v41 = vpop.f32.mrb[12].mxu1  ;;  %3799 = vmatpush3.bf16.msra.mxu0 %v3796_v28  ;;  %v3856_v28 = vpack.c.bf16 %v1278_v21, %v1277_v20  ;;  %v1269_v21 = vld [vmem:[#allocation8 + $0x78] sm:$0xff] }
 0x242   :  { %v449_v43 = vadd.f32 %v3032_v41, %v4388_v52  ;;  %v443_v44 = vpop.f32.mrb[13].mxu1  ;;  %3801 = vmatprep.subr.bf16.mxu0 %v3800_v36 }
 0x243   :  { %v444_v46 = vadd.f32 %v4388_v52, %v443_v44  ;;  %3083 = vmatprep.mubr.f32.mxu0 %v472_v40 }
 0x244   :  { %3084 = vmatmul.mubr.f32.gmra.mrb[26].mxu0 %v473_v42  ;;  %v475_v51 = vmax.f32 %v449_v43, 0.0 }
 0x245   :  { %v474_v49 = vmax.f32 %v444_v46, 0.0  ;;  %v3035_v50 = vpop.f32.mrb[14].mxu1  ;;  %3803 = vmatpush3.bf16.msra.mxu0 %v3800_v36  ;;  %v3860_v36 = vpack.c.bf16 %v1280_v31, %v1279_v30  ;;  %v1060_v30 = vld [vmem:[#allocation10 + $0x2b8] sm:$0xff] }
 0x246   :  { %v459_v53 = vadd.f32 %v3035_v50, %v4388_v52  ;;  %v453_v54 = vpop.f32.mrb[15].mxu1  ;;  %3805 = vmatprep.subr.bf16.mxu0 %v3804_v45 }
 0x247   :  { %v454_v56 = vadd.f32 %v4388_v52, %v453_v54  ;;  %3086 = vmatprep.mubr.f32.mxu0 %v474_v49 }
 0x248   :  { %3087 = vmatmul.mubr.f32.gmra.mrb[28].mxu0 %v475_v51  ;;  %v477_v62 = vmax.f32 %v459_v53, 0.0 }
 0x249   :  { %v476_v60 = vmax.f32 %v454_v56, 0.0  ;;  %v3126_v61 = vpop.f32.mrb[16].mxu1  ;;  %3807 = vmatpush3.bf16.msra.mxu0 %v3804_v45  ;;  %v3864_v45 = vpack.c.bf16 %v1282_v39, %v1281_v38  ;;  %v1066_v38 = vld [vmem:[#allocation10 + $0x2e8] sm:$0xff] }
 0x24a   :  { %v777_v63 = vadd.f32 %v3126_v61, %v4409_v57  ;;  %v771_v0 = vpop.f32.mrb[17].mxu1  ;;  %3809 = vmatprep.subr.bf16.mxu0 %v3808_v55 }
 0x24b   :  { %v772_v52 = vadd.f32 %v4409_v57, %v771_v0  ;;  %3089 = vmatprep.mubr.f32.mxu0 %v476_v60 }
 0x24c   :  { %3090 = vmatmul.mubr.f32.gmra.mrb[30].mxu0 %v477_v62  ;;  %v851_v6 = vmax.f32 %v777_v63, 0.0 }
 0x24d   :  { %v850_v4 = vmax.f32 %v772_v52, 0.0  ;;  %v3129_v5 = vpop.f32.mrb[18].mxu1  ;;  %3811 = vmatpush3.bf16.msra.mxu0 %v3808_v55  ;;  %v3868_v55 = vpack.c.bf16 %v1284_v48, %v1283_v47 }
 0x24e   :  { %v787_v7 = vadd.f32 %v3129_v5, %v4409_v57  ;;  %v781_v8 = vpop.f32.mrb[19].mxu1  ;;  %3845 = vmatprep.subr.bf16.mxu0 %v3844_v1  ;;  %v1255_v5 = vld [vmem:[#allocation8 + $0x8] sm:$0xff] }
 0x24f   :  { %v782_v10 = vadd.f32 %v4409_v57, %v781_v8  ;;  %3180 = vmatprep.mubr.f32.mxu0 %v850_v4  ;;  %v1254_v4 = vld [vmem:[#allocation8] sm:$0xff] }
 0x250   :  { %3181 = vmatmul.mubr.f32.vlgmr.msra.gmra.mrb[32].mxu0 %v851_v6  ;;  %v853_v15 = vmax.f32 %v787_v7, 0.0  ;;  %v1256_v6 = vld [vmem:[#allocation8 + $0x10] sm:$0xff]  ;;  %v1257_v7 = vld [vmem:[#allocation8 + $0x18] sm:$0xff]  ;;  %v1258_v8 = vld [vmem:[#allocation8 + $0x20] sm:$0xff] }
 0x251   :  { %v852_v13 = vmax.f32 %v782_v10, 0.0  ;;  %v3132_v14 = vpop.f32.mrb[20].mxu1  ;;  %3847 = vmatpush3.bf16.msra.mxu0 %v3844_v1  ;;  %v3872_v1 = vpack.c.bf16 %v1286_v59, %v1285_v58  ;;  %v1261_v10 = vld [vmem:[#allocation8 + $0x38] sm:$0xff] }
 0x252   :  { %v797_v16 = vadd.f32 %v3132_v14, %v4409_v57  ;;  %v791_v17 = vpop.f32.mrb[21].mxu1  ;;  %3849 = vmatprep.subr.bf16.mxu0 %v3848_v9  ;;  %v1265_v14 = vld [vmem:[#allocation8 + $0x58] sm:$0xff] }
 0x253   :  { %v792_v19 = vadd.f32 %v4409_v57, %v791_v17  ;;  %3183 = vmatprep.mubr.f32.mxu0 %v852_v13  ;;  %v1264_v13 = vld [vmem:[#allocation8 + $0x50] sm:$0xff] }
 0x254   :  { %3184 = vmatmul.mubr.f32.gmra.mrb[34].mxu0 %v853_v15  ;;  %v855_v25 = vmax.f32 %v797_v16, 0.0  ;;  %v1266_v15 = vld [vmem:[#allocation8 + $0x60] sm:$0xff]  ;;  %v1267_v16 = vld [vmem:[#allocation8 + $0x68] sm:$0xff]  ;;  %v1268_v17 = vld [vmem:[#allocation8 + $0x70] sm:$0xff] }
 0x255   :  { %v854_v22 = vmax.f32 %v792_v19, 0.0  ;;  %v3135_v23 = vpop.f32.mrb[22].mxu1  ;;  %3851 = vmatpush3.bf16.msra.mxu0 %v3848_v9  ;;  %v1260_v9 = vld [vmem:[#allocation8 + $0x30] sm:$0xff]  ;;  %v1054_v19 = vld [vmem:[#allocation10 + $0x288] sm:$0xff] }
 0x256   :  { %v807_v26 = vadd.f32 %v3135_v23, %v4409_v57  ;;  %v801_v27 = vpop.f32.mrb[23].mxu1  ;;  %3853 = vmatprep.subr.bf16.mxu0 %v3852_v18  ;;  %v1056_v23 = vld [vmem:[#allocation10 + $0x298] sm:$0xff] }
 0x257   :  { %v802_v29 = vadd.f32 %v4409_v57, %v801_v27  ;;  %3186 = vmatprep.mubr.f32.mxu0 %v854_v22  ;;  %v1055_v22 = vld [vmem:[#allocation10 + $0x290] sm:$0xff]  ;;  %v1058_v27 = vld [vmem:[#allocation10 + $0x2a8] sm:$0xff] }
 0x258   :  { %3187 = vmatmul.mubr.f32.gmra.mrb[36].mxu0 %v855_v25  ;;  %v857_v34 = vmax.f32 %v807_v26, 0.0  ;;  %v3816_v25 = vpack.c.bf16 %v1056_v23, %v1055_v22  ;;  %v1057_v26 = vld [vmem:[#allocation10 + $0x2a0] sm:$0xff]  ;;  %v1464_v22 = vld [vmem:[#allocation10 + $0x3b8] sm:$0xff] }
 0x259   :  { %v856_v32 = vmax.f32 %v802_v29, 0.0  ;;  %v3138_v33 = vpop.f32.mrb[24].mxu1  ;;  %3855 = vmatpush3.bf16.msra.mxu0 %v3852_v18  ;;  %v1053_v18 = vld [vmem:[#allocation10 + $0x280] sm:$0xff]  ;;  %v1059_v29 = vld [vmem:[#allocation10 + $0x2b0] sm:$0xff] }
 0x25a   :  { %v817_v35 = vadd.f32 %v3138_v33, %v4409_v57  ;;  %v811_v24 = vpop.f32.mrb[25].mxu1  ;;  %3857 = vmatprep.subr.bf16.mxu0 %v3856_v28  ;;  %v3812_v20 = vpack.c.bf16 %v1054_v19, %v1053_v18  ;;  %v3824_v31 = vpack.c.bf16 %v1060_v30, %v1059_v29  ;;  %v1062_v33 = vld [vmem:[#allocation10 + $0x2c8] sm:$0xff] }
 0x25b   :  { %v812_v37 = vadd.f32 %v4409_v57, %v811_v24  ;;  %3189 = vmatprep.mubr.f32.mxu0 %v856_v32  ;;  %v1061_v32 = vld [vmem:[#allocation10 + $0x2c0] sm:$0xff]  ;;  %v1064_v24 = vld [vmem:[#allocation10 + $0x2d8] sm:$0xff] }
 0x25c   :  { %3190 = vmatmul.mubr.f32.gmra.mrb[38].mxu0 %v857_v34  ;;  %v859_v42 = vmax.f32 %v817_v35, 0.0  ;;  %3813 = vmatprep.subr.bf16.mxu1 %v3812_v20  ;;  %v3828_v34 = vpack.c.bf16 %v1062_v33, %v1061_v32  ;;  %v1063_v35 = vld [vmem:[#allocation10 + $0x2d0] sm:$0xff]  ;;  %v1466_v32 = vld [vmem:[#allocation10 + $0x3c8] sm:$0xff] }
 0x25d   :  { %v858_v40 = vmax.f32 %v812_v37, 0.0  ;;  %v3141_v41 = vpop.f32.mrb[26].mxu1  ;;  %3859 = vmatpush3.bf16.msra.mxu0 %v3856_v28  ;;  %3815 = vmatpush3.bf16.msra.mxu1 %v3812_v20  ;;  %v3820_v28 = vpack.c.bf16 %v1058_v27, %v1057_v26  ;;  %v1065_v37 = vld [vmem:[#allocation10 + $0x2e0] sm:$0xff] }
 0x25e   :  { %v827_v43 = vadd.f32 %v3141_v41, %v4409_v57  ;;  %v821_v44 = vpop.f32.mrb[27].mxu1  ;;  %3861 = vmatprep.subr.bf16.mxu0 %v3860_v36  ;;  %3817 = vmatprep.subr.bf16.mxu1 %v3816_v25  ;;  %v3836_v39 = vpack.c.bf16 %v1066_v38, %v1065_v37  ;;  %v1068_v41 = vld [vmem:[#allocation10 + $0x2f8] sm:$0xff] }
 0x25f   :  { %v822_v46 = vadd.f32 %v4409_v57, %v821_v44  ;;  %3192 = vmatprep.mubr.f32.mxu0 %v858_v40  ;;  %v1067_v40 = vld [vmem:[#allocation10 + $0x2f0] sm:$0xff]  ;;  %v1458_v44 = vld [vmem:[#allocation10 + $0x388] sm:$0xff] }
 0x260   :  { %3193 = vmatmul.mubr.f32.gmra.mrb[40].mxu0 %v859_v42  ;;  %v861_v51 = vmax.f32 %v827_v43, 0.0  ;;  %v3840_v42 = vpack.c.bf16 %v1068_v41, %v1067_v40  ;;  %v1457_v43 = vld [vmem:[#allocation10 + $0x380] sm:$0xff]  ;;  %v1468_v40 = vld [vmem:[#allocation10 + $0x3d8] sm:$0xff] }
 0x261   :  { %v860_v49 = vmax.f32 %v822_v46, 0.0  ;;  %v3144_v50 = vpop.f32.mrb[28].mxu1  ;;  %3863 = vmatpush3.bf16.msra.mxu0 %v3860_v36  ;;  %3819 = vmatpush3.bf16.msra.mxu1 %v3816_v25  ;;  %v3832_v36 = vpack.c.bf16 %v1064_v24, %v1063_v35 }
 0x262   :  { %v837_v53 = vadd.f32 %v3144_v50, %v4409_v57  ;;  %v831_v54 = vpop.f32.mrb[29].mxu1  ;;  %3865 = vmatprep.subr.bf16.mxu0 %v3864_v45  ;;  %3821 = vmatprep.subr.bf16.mxu1 %v3820_v28 }
 0x263   :  { %v832_v56 = vadd.f32 %v4409_v57, %v831_v54  ;;  %3195 = vmatprep.mubr.f32.mxu0 %v860_v49 }
 0x264   :  { %3196 = vmatmul.mubr.f32.gmra.mrb[42].mxu0 %v861_v51  ;;  %v863_v62 = vmax.f32 %v837_v53, 0.0 }
 0x265   :  { %v862_v60 = vmax.f32 %v832_v56, 0.0  ;;  %v3147_v61 = vpop.f32.mrb[30].mxu1  ;;  %3867 = vmatpush3.bf16.msra.mxu0 %v3864_v45  ;;  %3823 = vmatpush3.bf16.msra.mxu1 %v3820_v28  ;;  %v3876_v45 = vpack.c.bf16 %v1458_v44, %v1457_v43 }
 0x266   :  { %v847_v63 = vadd.f32 %v3147_v61, %v4409_v57  ;;  %v841_v0 = vpop.f32.mrb[31].mxu1  ;;  %3869 = vmatprep.subr.bf16.mxu0 %v3868_v55  ;;  %3825 = vmatprep.subr.bf16.mxu1 %v3824_v31 }
 0x267   :  { %v842_v52 = vadd.f32 %v4409_v57, %v841_v0  ;;  %3198 = vmatprep.mubr.f32.mxu0 %v862_v60  ;;  %v1259_v57 = vld [vmem:[#allocation8 + $0x28] sm:$0xff]  ;;  %v4462_v0 = vld [vmem:[%s4925_s5 + $0x4] ss:$0 sm:$0xff] }
 0x268   :  { %3199 = vmatmul.mubr.f32.gmra.mrb[44].mxu0 %v863_v62  ;;  %v865_v3 = vmax.f32 %v847_v63, 0.0 }
 0x269   :  { %v864_v2 = vmax.f32 %v842_v52, 0.0  ;;  %3871 = vmatpush3.bf16.msra.mxu0 %v3868_v55  ;;  %3827 = vmatpush3.bf16.msra.mxu1 %v3824_v31  ;;  %v1465_v31 = vld [vmem:[#allocation10 + $0x3c0] sm:$0xff] }
 0x26a   :  { %3873 = vmatprep.subr.bf16.mxu0 %v3872_v1  ;;  %3829 = vmatprep.subr.bf16.mxu1 %v3828_v34  ;;  %v3892_v37 = vpack.c.bf16 %v1466_v32, %v1465_v31 }
 0x26b   :  { %3201 = vmatprep.mubr.f32.mxu0 %v864_v2 }
 0x26c   :  { %3202 = vmatmul.mubr.f32.gmra.mrb[46].mxu0 %v865_v3 }
 0x26d   :  { %3875 = vmatpush3.bf16.msra.mxu0 %v3872_v1  ;;  %3292 = vmatprep.mubr.f32.mxu0 %v1254_v4  ;;  %v1459_v4 = vld [vmem:[#allocation10 + $0x390] sm:$0xff] }
 0x26e   :  { %3831 = vmatpush3.bf16.msra.mxu1 %v3828_v34 }
 0x26f   :  { %3833 = vmatprep.subr.bf16.mxu1 %v3832_v36 }
 0x270   :  { %3293 = vmatmul.mubr.f32.vlgmr.msra.gmra.mrb[48].mxu0 %v1255_v5  ;;  %v1460_v5 = vld [vmem:[#allocation10 + $0x398] sm:$0xff] }
 0x271   :  { %3295 = vmatprep.mubr.f32.mxu0 %v1256_v6 }
 0x272   :  { %3835 = vmatpush3.bf16.msra.mxu1 %v3832_v36 }
 0x273   :  { %3837 = vmatprep.subr.bf16.mxu1 %v3836_v39 }
 0x274   :  { %3296 = vmatmul.mubr.f32.gmra.mrb[50].mxu0 %v1257_v7 }
 0x275   :  { %3298 = vmatprep.mubr.f32.mxu0 %v1258_v8 }
 0x276   :  { %3839 = vmatpush3.bf16.msra.mxu1 %v3836_v39  ;;  %v1467_v39 = vld [vmem:[#allocation10 + $0x3d0] sm:$0xff] }
 0x277   :  { %3841 = vmatprep.subr.bf16.mxu1 %v3840_v42 }
 0x278   :  { %3299 = vmatmul.mubr.f32.gmra.mrb[52].mxu0 %v1259_v57 }
 0x279   :  { %3301 = vmatprep.mubr.f32.mxu0 %v1260_v9 }
 0x27a   :  { %3843 = vmatpush3.bf16.msra.mxu1 %v3840_v42 }
 0x27b   :  { %3877 = vmatprep.subr.bf16.mxu1 %v3876_v45 }
 0x27c   :  { %3302 = vmatmul.mubr.f32.gmra.mrb[54].mxu0 %v1261_v10  ;;  %v3880_v10 = vpack.c.bf16 %v1460_v5, %v1459_v4 }
 0x27d   :  { %3304 = vmatprep.mubr.f32.mxu0 %v1262_v11 }
 0x280   :  { %3305 = vmatmul.mubr.f32.gmra.mrb[56].mxu0 %v1263_v12  ;;  %v1461_v12 = vld [vmem:[#allocation10 + $0x3a0] sm:$0xff] }
 0x281   :  { %3307 = vmatprep.mubr.f32.mxu0 %v1264_v13  ;;  %v1462_v13 = vld [vmem:[#allocation10 + $0x3a8] sm:$0xff] }
 0x282   :  { %v3884_v19 = vpack.c.bf16 %v1462_v13, %v1461_v12 }
 0x284   :  { %3308 = vmatmul.mubr.f32.gmra.mrb[58].mxu0 %v1265_v14 }
 0x285   :  { %3310 = vmatprep.mubr.f32.mxu0 %v1266_v15 }
 0x288   :  { %3311 = vmatmul.mubr.f32.gmra.mrb[60].mxu0 %v1267_v16 }
 0x289   :  { %3313 = vmatprep.mubr.f32.mxu0 %v1268_v17 }
 0x28c   :  { %3314 = vmatmul.mubr.f32.gmra.mrb[62].mxu0 %v1269_v21  ;;  %v1463_v21 = vld [vmem:[#allocation10 + $0x3b0] sm:$0xff] }
 0x28d   :  { %v3888_v29 = vpack.c.bf16 %v1464_v22, %v1463_v21 }
 0x303   :  { %v4427_v46 = vpop.f32.mrb[16].mxu0 }
 0x304   :  { %v4429_v47 = vpop.f32.mrb[17].mxu0 }
 0x307   :  { %v4431_v48 = vpop.f32.mrb[18].mxu0 }
 0x308   :  { %v4433_v49 = vpop.f32.mrb[19].mxu0 }
 0x30b   :  { %v4435_v50 = vpop.f32.mrb[20].mxu0 }
 0x30c   :  { %v4437_v51 = vpop.f32.mrb[21].mxu0 }
 0x30f   :  { %v4439_v53 = vpop.f32.mrb[22].mxu0 }
 0x310   :  { %v4441_v54 = vpop.f32.mrb[23].mxu0 }
 0x313   :  { %v4443_v55 = vpop.f32.mrb[24].mxu0 }
 0x314   :  { %v4445_v56 = vpop.f32.mrb[25].mxu0 }
 0x317   :  { %v4447_v58 = vpop.f32.mrb[26].mxu0 }
 0x318   :  { %v4449_v59 = vpop.f32.mrb[27].mxu0 }
 0x31b   :  { %v4451_v60 = vpop.f32.mrb[28].mxu0 }
 0x31c   :  { %v4453_v61 = vpop.f32.mrb[29].mxu0 }
 0x31f   :  { %v4455_v62 = vpop.f32.mrb[30].mxu0 }
 0x320   :  { %v4457_v63 = vpop.f32.mrb[31].mxu0 }
 0x323   :  { %v3182_v1 = vpop.f32.mrb[32].mxu0 }
 0x324   :  { %v963_v52 = vadd.f32 %v3182_v1, %v4462_v0  ;;  %v957_v2 = vpop.f32.mrb[33].mxu0  ;;  %v3896_v1 = vpack.c.bf16 %v1468_v40, %v1467_v39 }
 0x325   :  { %v958_v3 = vadd.f32 %v4462_v0, %v957_v2  ;;  %v1469_v2 = vld [vmem:[#allocation10 + $0x3e0] sm:$0xff] }
 0x326   :  { %v1037_v8 = vmax.f32 %v963_v52, 0.0 }
 0x327   :  { %v1036_v6 = vmax.f32 %v958_v3, 0.0  ;;  %v3185_v7 = vpop.f32.mrb[34].mxu0  ;;  %v1470_v3 = vld [vmem:[#allocation10 + $0x3e8] sm:$0xff] }
 0x328   :  { %v973_v57 = vadd.f32 %v3185_v7, %v4462_v0  ;;  %v967_v9 = vpop.f32.mrb[35].mxu0 }
 0x329   :  { %v968_v11 = vadd.f32 %v4462_v0, %v967_v9  ;;  %3236 = vmatprep.mubr.f32.mxu1 %v1036_v6 }
 0x32a   :  { %3237 = vmatmul.mubr.f32.vlgmr.msra.gmra.mrb[32].mxu1 %v1037_v8  ;;  %v1039_v16 = vmax.f32 %v973_v57, 0.0  ;;  %v3900_v57 = vpack.c.bf16 %v1470_v3, %v1469_v2 }
 0x32b   :  { %v1038_v14 = vmax.f32 %v968_v11, 0.0  ;;  %v3188_v15 = vpop.f32.mrb[36].mxu0  ;;  %3879 = vmatpush3.bf16.msra.mxu1 %v3876_v45  ;;  %v1472_v11 = vld [vmem:[#allocation10 + $0x3f8] sm:$0xff] }
 0x32c   :  { %v983_v17 = vadd.f32 %v3188_v15, %v4462_v0  ;;  %v977_v18 = vpop.f32.mrb[37].mxu0  ;;  %3881 = vmatprep.subr.bf16.mxu1 %v3880_v10 }
 0x32d   :  { %v978_v20 = vadd.f32 %v4462_v0, %v977_v18  ;;  %3239 = vmatprep.mubr.f32.mxu1 %v1038_v14 }
 0x32e   :  { %3240 = vmatmul.mubr.f32.gmra.mrb[34].mxu1 %v1039_v16  ;;  %v1041_v26 = vmax.f32 %v983_v17, 0.0 }
 0x32f   :  { %v1040_v23 = vmax.f32 %v978_v20, 0.0  ;;  %v3191_v25 = vpop.f32.mrb[38].mxu0  ;;  %3883 = vmatpush3.bf16.msra.mxu1 %v3880_v10  ;;  %v1471_v10 = vld [vmem:[#allocation10 + $0x3f0] sm:$0xff] }
 0x330   :  { %v993_v27 = vadd.f32 %v3191_v25, %v4462_v0  ;;  %v987_v28 = vpop.f32.mrb[39].mxu0  ;;  %3885 = vmatprep.subr.bf16.mxu1 %v3884_v19  ;;  %v3904_v17 = vpack.c.bf16 %v1472_v11, %v1471_v10 }
 0x331   :  { %v988_v30 = vadd.f32 %v4462_v0, %v987_v28  ;;  %3242 = vmatprep.mubr.f32.mxu1 %v1040_v23 }
 0x332   :  { %3243 = vmatmul.mubr.f32.gmra.mrb[36].mxu1 %v1041_v26  ;;  %v1043_v35 = vmax.f32 %v993_v27, 0.0 }
 0x333   :  { %v1042_v33 = vmax.f32 %v988_v30, 0.0  ;;  %v3194_v34 = vpop.f32.mrb[40].mxu0  ;;  %3887 = vmatpush3.bf16.msra.mxu1 %v3884_v19  ;;  %v4483_v19 = vld [vmem:[%s4925_s5 + $0x6] ss:$0 sm:$0xff] }
 0x334   :  { %v1003_v24 = vadd.f32 %v3194_v34, %v4462_v0  ;;  %v997_v36 = vpop.f32.mrb[41].mxu0  ;;  %3889 = vmatprep.subr.bf16.mxu1 %v3888_v29 }
 0x335   :  { %v998_v38 = vadd.f32 %v4462_v0, %v997_v36  ;;  %3245 = vmatprep.mubr.f32.mxu1 %v1042_v33 }
 0x336   :  { %3246 = vmatmul.mubr.f32.gmra.mrb[38].mxu1 %v1043_v35  ;;  %v1045_v43 = vmax.f32 %v1003_v24, 0.0 }
 0x337   :  { %v1044_v41 = vmax.f32 %v998_v38, 0.0  ;;  %v3197_v42 = vpop.f32.mrb[42].mxu0  ;;  %3891 = vmatpush3.bf16.msra.mxu1 %v3888_v29 }
 0x338   :  { %v1013_v44 = vadd.f32 %v3197_v42, %v4462_v0  ;;  %v1007_v45 = vpop.f32.mrb[43].mxu0  ;;  %3893 = vmatprep.subr.bf16.mxu1 %v3892_v37 }
 0x339   :  { %v1008_v52 = vadd.f32 %v4462_v0, %v1007_v45  ;;  %3248 = vmatprep.mubr.f32.mxu1 %v1044_v41 }
 0x33a   :  { %3249 = vmatmul.mubr.f32.gmra.mrb[40].mxu1 %v1045_v43  ;;  %v1047_v6 = vmax.f32 %v1013_v44, 0.0 }
 0x33b   :  { %v1046_v4 = vmax.f32 %v1008_v52, 0.0  ;;  %v3200_v5 = vpop.f32.mrb[44].mxu0  ;;  %3895 = vmatpush3.bf16.msra.mxu1 %v3892_v37 }
 0x33c   :  { %v1023_v7 = vadd.f32 %v3200_v5, %v4462_v0  ;;  %v1017_v8 = vpop.f32.mrb[45].mxu0  ;;  %3897 = vmatprep.subr.bf16.mxu1 %v3896_v1 }
 0x33d   :  { %v1018_v9 = vadd.f32 %v4462_v0, %v1017_v8  ;;  %3251 = vmatprep.mubr.f32.mxu1 %v1046_v4 }
 0x33e   :  { %3252 = vmatmul.mubr.f32.gmra.mrb[42].mxu1 %v1047_v6  ;;  %v1049_v14 = vmax.f32 %v1023_v7, 0.0 }
 0x33f   :  { %v1048_v12 = vmax.f32 %v1018_v9, 0.0  ;;  %v3203_v13 = vpop.f32.mrb[46].mxu0  ;;  %3899 = vmatpush3.bf16.msra.mxu1 %v3896_v1 }
 0x340   :  { %v1033_v15 = vadd.f32 %v3203_v13, %v4462_v0  ;;  %v1027_v16 = vpop.f32.mrb[47].mxu0  ;;  %3901 = vmatprep.subr.bf16.mxu1 %v3900_v57 }
 0x341   :  { %v1028_v18 = vadd.f32 %v4462_v0, %v1027_v16  ;;  %3254 = vmatprep.mubr.f32.mxu1 %v1048_v12 }
 0x342   :  { %3255 = vmatmul.mubr.f32.gmra.mrb[44].mxu1 %v1049_v14  ;;  %v1051_v22 = vmax.f32 %v1033_v15, 0.0 }
 0x343   :  { %v1050_v20 = vmax.f32 %v1028_v18, 0.0  ;;  %v3294_v21 = vpop.f32.mrb[48].mxu0  ;;  %3903 = vmatpush3.bf16.msra.mxu1 %v3900_v57 }
 0x344   :  { %v1367_v23 = vadd.f32 %v3294_v21, %v4483_v19  ;;  %v1361_v25 = vpop.f32.mrb[49].mxu0  ;;  %3905 = vmatprep.subr.bf16.mxu1 %v3904_v17 }
 0x345   :  { %v1362_v26 = vadd.f32 %v4483_v19, %v1361_v25  ;;  %3257 = vmatprep.mubr.f32.mxu1 %v1050_v20  ;;  %v1644_v25 = vld [vmem:[#allocation10 + $0x408] sm:$0xff] }
 0x346   :  { %3258 = vmatmul.mubr.f32.gmra.mrb[46].mxu1 %v1051_v22  ;;  %v1441_v28 = vmax.f32 %v1367_v23, 0.0  ;;  %v1643_v23 = vld [vmem:[#allocation10 + $0x400] sm:$0xff] }
 0x347   :  { %v1440_v0 = vmax.f32 %v1362_v26, 0.0  ;;  %v3297_v27 = vpop.f32.mrb[50].mxu0  ;;  %3907 = vmatpush3.bf16.msra.mxu1 %v3904_v17  ;;  %v3908_v26 = vpack.c.bf16 %v1644_v25, %v1643_v23 }
 0x348   :  { %v1377_v29 = vadd.f32 %v3297_v27, %v4483_v19  ;;  %v1371_v30 = vpop.f32.mrb[51].mxu0  ;;  %v1646_v27 = vld [vmem:[#allocation10 + $0x418] sm:$0xff] }
 0x349   :  { %v1372_v31 = vadd.f32 %v4483_v19, %v1371_v30  ;;  %3348 = vmatprep.mubr.f32.mxu1 %v1440_v0  ;;  %3909 = vmatprep.subr.bf16.mxu0 %v3908_v26  ;;  %v1645_v0 = vld [vmem:[#allocation10 + $0x410] sm:$0xff]  ;;  %v1648_v30 = vld [vmem:[#allocation10 + $0x428] sm:$0xff] }
 0x34a   :  { %3349 = vmatmul.mubr.f32.vlgmr.msra.gmra.mrb[48].mxu1 %v1441_v28  ;;  %v1443_v34 = vmax.f32 %v1377_v29, 0.0  ;;  %3911 = vmatpush3.bf16.msra.mxu0 %v3908_v26  ;;  %v3912_v28 = vpack.c.bf16 %v1646_v27, %v1645_v0  ;;  %v1647_v29 = vld [vmem:[#allocation10 + $0x420] sm:$0xff] }
 0x34b   :  { %v1442_v32 = vmax.f32 %v1372_v31, 0.0  ;;  %v3300_v33 = vpop.f32.mrb[52].mxu0  ;;  %v3916_v31 = vpack.c.bf16 %v1648_v30, %v1647_v29 }
 0x34c   :  { %v1387_v35 = vadd.f32 %v3300_v33, %v4483_v19  ;;  %v1381_v24 = vpop.f32.mrb[53].mxu0  ;;  %3913 = vmatprep.subr.bf16.mxu0 %v3912_v28 }
 0x34d   :  { %v1382_v36 = vadd.f32 %v4483_v19, %v1381_v24  ;;  %3351 = vmatprep.mubr.f32.mxu1 %v1442_v32  ;;  %v1650_v32 = vld [vmem:[#allocation10 + $0x438] sm:$0xff] }
 0x34e   :  { %3352 = vmatmul.mubr.f32.gmra.mrb[50].mxu1 %v1443_v34  ;;  %v1445_v39 = vmax.f32 %v1387_v35, 0.0  ;;  %3915 = vmatpush3.bf16.msra.mxu0 %v3912_v28  ;;  %v1651_v34 = vld [vmem:[#allocation10 + $0x440] sm:$0xff]  ;;  %v1652_v35 = vld [vmem:[#allocation10 + $0x448] sm:$0xff] }
 0x34f   :  { %v1444_v37 = vmax.f32 %v1382_v36, 0.0  ;;  %v3303_v38 = vpop.f32.mrb[54].mxu0  ;;  %3917 = vmatprep.subr.bf16.mxu0 %v3916_v31  ;;  %v3924_v24 = vpack.c.bf16 %v1652_v35, %v1651_v34  ;;  %v1653_v36 = vld [vmem:[#allocation10 + $0x450] sm:$0xff] }
 0x350   :  { %v1397_v40 = vadd.f32 %v3303_v38, %v4483_v19  ;;  %v1391_v41 = vpop.f32.mrb[55].mxu0 }
 0x351   :  { %v1392_v42 = vadd.f32 %v4483_v19, %v1391_v41  ;;  %3354 = vmatprep.mubr.f32.mxu1 %v1444_v37  ;;  %v1654_v37 = vld [vmem:[#allocation10 + $0x458] sm:$0xff] }
 0x352   :  { %3355 = vmatmul.mubr.f32.gmra.mrb[52].mxu1 %v1445_v39  ;;  %v1447_v45 = vmax.f32 %v1397_v40, 0.0  ;;  %3919 = vmatpush3.bf16.msra.mxu0 %v3916_v31  ;;  %v3928_v38 = vpack.c.bf16 %v1654_v37, %v1653_v36  ;;  %v1655_v39 = vld [vmem:[#allocation10 + $0x460] sm:$0xff]  ;;  %v1656_v40 = vld [vmem:[#allocation10 + $0x468] sm:$0xff] }
 0x353   :  { %v1446_v43 = vmax.f32 %v1392_v42, 0.0  ;;  %v3306_v44 = vpop.f32.mrb[56].mxu0  ;;  %v3932_v41 = vpack.c.bf16 %v1656_v40, %v1655_v39  ;;  %v1657_v42 = vld [vmem:[#allocation10 + $0x470] sm:$0xff] }
 0x354   :  { %v1407_v1 = vadd.f32 %v3306_v44, %v4483_v19  ;;  %v1401_v52 = vpop.f32.mrb[57].mxu0 }
 0x355   :  { %v1402_v2 = vadd.f32 %v4483_v19, %v1401_v52  ;;  %3357 = vmatprep.mubr.f32.mxu1 %v1446_v43  ;;  %v1658_v43 = vld [vmem:[#allocation10 + $0x478] sm:$0xff] }
 0x356   :  { %3358 = vmatmul.mubr.f32.gmra.mrb[54].mxu1 %v1447_v45  ;;  %v1449_v5 = vmax.f32 %v1407_v1, 0.0  ;;  %v3936_v44 = vpack.c.bf16 %v1658_v43, %v1657_v42  ;;  %v4504_v45 = vld [vmem:[%s4925_s5 + $0x2] ss:$0 sm:$0xff]  ;;  %v4509_v1 = vld [vmem:[%s4925_s5 + $0x5] ss:$0 sm:$0xff] }
 0x357   :  { %v1448_v3 = vmax.f32 %v1402_v2, 0.0  ;;  %v3309_v4 = vpop.f32.mrb[58].mxu0  ;;  %v575_v52 = vadd.f32 %v4427_v46, %v4504_v45  ;;  %v570_v2 = vadd.f32 %v4504_v45, %v4429_v47 }
 0x358   :  { %v1417_v6 = vadd.f32 %v3309_v4, %v4483_v19  ;;  %v1411_v7 = vpop.f32.mrb[59].mxu0 }
 0x359   :  { %v1412_v8 = vadd.f32 %v4483_v19, %v1411_v7  ;;  %3360 = vmatprep.mubr.f32.mxu1 %v1448_v3  ;;  %v649_v7 = vmul.f32 0.5, %v575_v52 }
 0x35a   :  { %3361 = vmatmul.mubr.f32.gmra.mrb[56].mxu1 %v1449_v5  ;;  %v1451_v10 = vmax.f32 %v1417_v6, 0.0 }
 0x35b   :  { %v1450_v57 = vmax.f32 %v1412_v8, 0.0  ;;  %v3312_v9 = vpop.f32.mrb[60].mxu0  ;;  %v585_v8 = vadd.f32 %v4431_v48, %v4504_v45  ;;  %v595_v48 = vadd.f32 %v4435_v50, %v4504_v45  ;;  %v605_v50 = vadd.f32 %v4439_v53, %v4504_v45 }
 0x35c   :  { %v1427_v11 = vadd.f32 %v3312_v9, %v4483_v19  ;;  %v1421_v12 = vpop.f32.mrb[61].mxu0  ;;  %v648_v9 = vmul.f32 0.5, %v570_v2  ;;  %v615_v53 = vadd.f32 %v4443_v55, %v4504_v45  ;;  %v625_v55 = vadd.f32 %v4447_v58, %v4504_v45 }
 0x35d   :  { %v1422_v13 = vadd.f32 %v4483_v19, %v1421_v12  ;;  %3363 = vmatprep.mubr.f32.mxu1 %v1450_v57  ;;  %v653_v27 = vmul.f32 0.5, %v595_v48  ;;  %v635_v58 = vadd.f32 %v4451_v60, %v4504_v45  ;;  %v645_v60 = vadd.f32 %v4455_v62, %v4504_v45  ;;  %v4590_v62 = vld [vmem:[%s4925_s5 + $0x7] ss:$0 sm:$0xff] }
 0x35e   :  { %3364 = vmatmul.mubr.f32.gmra.mrb[58].mxu1 %v1451_v10  ;;  %v1453_v16 = vmax.f32 %v1427_v11, 0.0  ;;  %v580_v10 = vadd.f32 %v4504_v45, %v4433_v49  ;;  %v590_v49 = vadd.f32 %v4504_v45, %v4437_v51  ;;  %v600_v51 = vadd.f32 %v4504_v45, %v4441_v54 }
 0x35f   :  { %v1452_v14 = vmax.f32 %v1422_v13, 0.0  ;;  %v3315_v15 = vpop.f32.mrb[62].mxu0  ;;  %v610_v54 = vadd.f32 %v4504_v45, %v4445_v56  ;;  %v657_v52 = vmul.f32 0.5, %v615_v53  ;;  %v620_v56 = vadd.f32 %v4504_v45, %v4449_v59 }
 0x360   :  { %v1437_v17 = vadd.f32 %v3315_v15, %v4483_v19  ;;  %v1431_v18 = vpop.f32.mrb[63].mxu0  ;;  %v652_v29 = vmul.f32 0.5, %v590_v49  ;;  %v654_v37 = vmul.f32 0.5, %v600_v51  ;;  %v630_v59 = vadd.f32 %v4504_v45, %v4453_v61 }
 0x361   :  { %v1432_v20 = vadd.f32 %v4483_v19, %v1431_v18  ;;  %3366 = vmatprep.mubr.f32.mxu1 %v1452_v14  ;;  %v1649_v19 = vld [vmem:[#allocation10 + $0x430] sm:$0xff]  ;;  %v650_v18 = vmul.f32 0.5, %v580_v10  ;;  %v659_v10 = vmul.f32 0.5, %v625_v55  ;;  %v661_v49 = vmul.f32 0.5, %v635_v58 }
 0x362   :  { %3367 = vmatmul.mubr.f32.gmra.mrb[60].mxu1 %v1453_v16  ;;  %v1455_v22 = vmax.f32 %v1437_v17, 0.0  ;;  %v3920_v33 = vpack.c.bf16 %v1650_v32, %v1649_v19  ;;  %v651_v16 = vmul.f32 0.5, %v585_v8  ;;  %v640_v61 = vadd.f32 %v4504_v45, %v4457_v63 }
 0x363   :  { %v1454_v21 = vmax.f32 %v1432_v20, 0.0  ;;  %v663_v51 = vmul.f32 0.5, %v645_v60 }
 0x364   :  { %3921 = vmatprep.subr.bf16.mxu0 %v3920_v33 }
 0x365   :  { %3369 = vmatprep.mubr.f32.mxu1 %v1454_v21  ;;  %3923 = vmatpush3.bf16.msra.mxu0 %v3920_v33 }
 0x366   :  { %3370 = vmatmul.mubr.f32.gmra.mrb[62].mxu1 %v1455_v22  ;;  %3925 = vmatprep.subr.bf16.mxu0 %v3924_v24 }
 0x369   :  { %3927 = vmatpush3.bf16.msra.mxu0 %v3924_v24  ;;  %v655_v24 = vmul.f32 0.5, %v605_v50 }
 0x36a   :  { %3929 = vmatprep.subr.bf16.mxu0 %v3928_v38 }
 0x36d   :  { %3931 = vmatpush3.bf16.msra.mxu0 %v3928_v38 }
 0x36e   :  { %3933 = vmatprep.subr.bf16.mxu0 %v3932_v41 }
 0x371   :  { %3935 = vmatpush3.bf16.msra.mxu0 %v3932_v41 }
 0x372   :  { %3937 = vmatprep.subr.bf16.mxu0 %v3936_v44 }
 0x375   :  { %3939 = vmatpush3.bf16.msra.mxu0 %v3936_v44 }
 0x3fd   :  { %v3238_v3 = vpop.f32.mrb[32].mxu1 }
 0x3fe   :  { %v1149_v4 = vadd.f32 %v3238_v3, %v4509_v1  ;;  %v1143_v5 = vpop.f32.mrb[33].mxu1  ;;  %v656_v3 = vmul.f32 0.5, %v610_v54 }
 0x3ff   :  { %v1144_v6 = vadd.f32 %v4509_v1, %v1143_v5 }
 0x400   :  { %v1223_v57 = vmul.f32 0.3, %v1149_v4 }
 0x401   :  { %v1222_v11 = vmul.f32 0.3, %v1144_v6  ;;  %v3241_v46 = vpop.f32.mrb[34].mxu1 }
 0x402   :  { %v4521_v12 = vadd.f32 %v1223_v57, %v649_v7  ;;  %v1159_v47 = vadd.f32 %v3241_v46, %v4509_v1  ;;  %v1153_v13 = vpop.f32.mrb[35].mxu1  ;;  %v658_v46 = vmul.f32 0.5, %v620_v56 }
 0x403   :  { %v4524_v14 = vadd.f32 %v1222_v11, %v648_v9  ;;  %v1154_v15 = vadd.f32 %v4509_v1, %v1153_v13 }
 0x404   :  { %v1225_v17 = vmul.f32 0.3, %v1159_v47 }
 0x405   :  { %v1224_v20 = vmul.f32 0.3, %v1154_v15  ;;  %v3244_v21 = vpop.f32.mrb[36].mxu1 }
 0x406   :  { %v4531_v22 = vadd.f32 %v1225_v17, %v651_v16  ;;  %v1169_v23 = vadd.f32 %v3244_v21, %v4509_v1  ;;  %v1163_v25 = vpop.f32.mrb[37].mxu1  ;;  %v660_v21 = vmul.f32 0.5, %v630_v59 }
 0x407   :  { %v4534_v26 = vadd.f32 %v1224_v20, %v650_v18  ;;  %v1164_v0 = vadd.f32 %v4509_v1, %v1163_v25 }
 0x408   :  { %v1227_v28 = vmul.f32 0.3, %v1169_v23 }
 0x409   :  { %v1226_v30 = vmul.f32 0.3, %v1164_v0  ;;  %v3247_v31 = vpop.f32.mrb[38].mxu1 }
 0x40a   :  { %v4541_v19 = vadd.f32 %v1227_v28, %v653_v27  ;;  %v1179_v32 = vadd.f32 %v3247_v31, %v4509_v1  ;;  %v1173_v33 = vpop.f32.mrb[39].mxu1  ;;  %v662_v31 = vmul.f32 0.5, %v640_v61 }
 0x40b   :  { %v4544_v34 = vadd.f32 %v1226_v30, %v652_v29  ;;  %v1174_v35 = vadd.f32 %v4509_v1, %v1173_v33 }
 0x40c   :  { %v1229_v36 = vmul.f32 0.3, %v1179_v32 }
 0x40d   :  { %v1228_v38 = vmul.f32 0.3, %v1174_v35  ;;  %v3250_v39 = vpop.f32.mrb[40].mxu1 }
 0x40e   :  { %v4551_v40 = vadd.f32 %v1229_v36, %v655_v24  ;;  %v1189_v41 = vadd.f32 %v3250_v39, %v4509_v1  ;;  %v1183_v42 = vpop.f32.mrb[41].mxu1 }
 0x40f   :  { %v4554_v43 = vadd.f32 %v1228_v38, %v654_v37  ;;  %v1184_v44 = vadd.f32 %v4509_v1, %v1183_v42 }
 0x410   :  { %v1231_v2 = vmul.f32 0.3, %v1189_v41 }
 0x411   :  { %v1230_v4 = vmul.f32 0.3, %v1184_v44  ;;  %v3253_v5 = vpop.f32.mrb[42].mxu1 }
 0x412   :  { %v4561_v6 = vadd.f32 %v1231_v2, %v657_v52  ;;  %v1199_v7 = vadd.f32 %v3253_v5, %v4509_v1  ;;  %v1193_v8 = vpop.f32.mrb[43].mxu1 }
 0x413   :  { %v4564_v57 = vadd.f32 %v1230_v4, %v656_v3  ;;  %v1194_v9 = vadd.f32 %v4509_v1, %v1193_v8 }
 0x414   :  { %v1233_v11 = vmul.f32 0.3, %v1199_v7 }
 0x415   :  { %v1232_v47 = vmul.f32 0.3, %v1194_v9  ;;  %v3256_v13 = vpop.f32.mrb[44].mxu1 }
 0x416   :  { %v4571_v15 = vadd.f32 %v1233_v11, %v659_v10  ;;  %v1209_v16 = vadd.f32 %v3256_v13, %v4509_v1  ;;  %v1203_v48 = vpop.f32.mrb[45].mxu1 }
 0x417   :  { %v4574_v17 = vadd.f32 %v1232_v47, %v658_v46  ;;  %v1204_v18 = vadd.f32 %v4509_v1, %v1203_v48 }
 0x418   :  { %v1235_v20 = vmul.f32 0.3, %v1209_v16 }
 0x419   :  { %v1234_v23 = vmul.f32 0.3, %v1204_v18  ;;  %v3259_v25 = vpop.f32.mrb[46].mxu1 }
 0x41a   :  { %v4581_v0 = vadd.f32 %v1235_v20, %v661_v49  ;;  %v1219_v27 = vadd.f32 %v3259_v25, %v4509_v1  ;;  %v1213_v50 = vpop.f32.mrb[47].mxu1 }
 0x41b   :  { %v4584_v28 = vadd.f32 %v1234_v23, %v660_v21  ;;  %v1214_v29 = vadd.f32 %v4509_v1, %v1213_v50 }
 0x41c   :  { %v1237_v30 = vmul.f32 0.3, %v1219_v27 }
 0x41d   :  { %v1236_v63 = vmul.f32 0.3, %v1214_v29  ;;  %v3350_v45 = vpop.f32.mrb[48].mxu1 }
 0x41e   :  { %v4592_v32 = vadd.f32 %v1237_v30, %v663_v51  ;;  %v1553_v33 = vadd.f32 %v3350_v45, %v4590_v62  ;;  %v1547_v35 = vpop.f32.mrb[49].mxu1 }
 0x41f   :  { %v4595_v24 = vadd.f32 %v1236_v63, %v662_v31  ;;  %v1548_v53 = vadd.f32 %v4590_v62, %v1547_v35  ;;  %v4619_v35 = vld [vmem:[%s4925_s5 + $0x8] ss:$0 sm:$0xff]  ;;  %s4239_s5 = smov [#allocation11]  }
 0x420   :  { %v1627_v37 = vmax.f32 %v1553_v33, 0.0  ;;  %v4612_v33 = vld [vmem:[#allocation2] sm:$0xff]  ;;  %s2477_s25 = sshll.u32 %s4239_s5, 4  ;;  %s2478_s25 = int_to_ptr.vmem [resolvable:$true] %s2477_s25 }
 0x421   :  { %v1626_v1 = vmax.f32 %v1548_v53, 0.0  ;;  %v3353_v36 = vpop.f32.mrb[50].mxu1  ;;  %3460 = vmatprep.mubr.f32.mxu1 %v4612_v33  ;;  %s4202_s27 = scalar_lea.vmem %s2478_s25, 2048  ;;  %p4207_p13 = scmp.lt.s32.totalorder %s2478_s25, %s2478_s25 }
 0x422   :  { %v1563_v54 = vadd.f32 %v3353_v36, %v4590_v62  ;;  %v1557_v38 = vpop.f32.mrb[51].mxu1  ;;  %p4203_p12 = scmp.ne.s32.totalorder %s2478_s25, %s4202_s27  ;;  %p4208_p0 = scmp.lt.s32.totalorder %s4202_s27, %s4202_s27 }
 0x423   :  { %v1558_v39 = vadd.f32 %v4590_v62, %v1557_v38  ;;  %3404 = vmatprep.mubr.f32.mxu0 %v1626_v1 }
 0x424   :  { %3405 = vmatmul.mubr.f32.vlgmr.msra.gmra.mrb[64].mxu0 %v1627_v37  ;;  %v1629_v44 = vmax.f32 %v1563_v54, 0.0  ;;  %p4209_p1 = por %p4208_p0, %p4207_p13 }
 0x425   :  { %v1628_v41 = vmax.f32 %v1558_v39, 0.0  ;;  %v3356_v42 = vpop.f32.mrb[52].mxu1 }
 0x426   :  { %v1573_v52 = vadd.f32 %v3356_v42, %v4590_v62  ;;  %v1567_v55 = vpop.f32.mrb[53].mxu1  ;;  %p4210_p2 = pnand %p4209_p1, %p4203_p12 }
 0x427   :  { %v1568_v2 = vadd.f32 %v4590_v62, %v1567_v55  ;;  %3407 = vmatprep.mubr.f32.mxu0 %v1628_v41 }
 0x428   :  { %3408 = vmatmul.mubr.f32.gmra.mrb[66].mxu0 %v1629_v44  ;;  %v1631_v4 = vmax.f32 %v1573_v52, 0.0 }
 0x429   :  { %v1630_v3 = vmax.f32 %v1568_v2, 0.0  ;;  %v3359_v56 = vpop.f32.mrb[54].mxu1 }
 0x42a   :  { %v1583_v5 = vadd.f32 %v3359_v56, %v4590_v62  ;;  %v1577_v7 = vpop.f32.mrb[55].mxu1 }
 0x42b   :  { %v1578_v8 = vadd.f32 %v4590_v62, %v1577_v7  ;;  %3410 = vmatprep.mubr.f32.mxu0 %v1630_v3 }
 0x42c   :  { %3411 = vmatmul.mubr.f32.gmra.mrb[68].mxu0 %v1631_v4  ;;  %v1633_v58 = vmax.f32 %v1583_v5, 0.0 }
 0x42d   :  { %v1632_v9 = vmax.f32 %v1578_v8, 0.0  ;;  %v3362_v10 = vpop.f32.mrb[56].mxu1 }
 0x42e   :  { %v1593_v11 = vadd.f32 %v3362_v10, %v4590_v62  ;;  %v1587_v46 = vpop.f32.mrb[57].mxu1 }
 0x42f   :  { %v1588_v59 = vadd.f32 %v4590_v62, %v1587_v46  ;;  %3413 = vmatprep.mubr.f32.mxu0 %v1632_v9 }
 0x430   :  { %3414 = vmatmul.mubr.f32.gmra.mrb[70].mxu0 %v1633_v58  ;;  %v1635_v16 = vmax.f32 %v1593_v11, 0.0 }
 0x431   :  { %v1634_v47 = vmax.f32 %v1588_v59, 0.0  ;;  %v3365_v13 = vpop.f32.mrb[58].mxu1 }
 0x432   :  { %v1603_v48 = vadd.f32 %v3365_v13, %v4590_v62  ;;  %v1597_v18 = vpop.f32.mrb[59].mxu1 }
 0x433   :  { %v1598_v49 = vadd.f32 %v4590_v62, %v1597_v18  ;;  %3416 = vmatprep.mubr.f32.mxu0 %v1634_v47 }
 0x434   :  { %3417 = vmatmul.mubr.f32.gmra.mrb[72].mxu0 %v1635_v16  ;;  %v1637_v21 = vmax.f32 %v1603_v48, 0.0 }
 0x435   :  { %v1636_v60 = vmax.f32 %v1598_v49, 0.0  ;;  %v3368_v20 = vpop.f32.mrb[60].mxu1 }
 0x436   :  { %v1613_v61 = vadd.f32 %v3368_v20, %v4590_v62  ;;  %v1607_v23 = vpop.f32.mrb[61].mxu1 }
 0x437   :  { %v1608_v25 = vadd.f32 %v4590_v62, %v1607_v23  ;;  %3419 = vmatprep.mubr.f32.mxu0 %v1636_v60 }
 0x438   :  { %3420 = vmatmul.mubr.f32.gmra.mrb[74].mxu0 %v1637_v21  ;;  %v1639_v29 = vmax.f32 %v1613_v61, 0.0 }
 0x439   :  { %v1638_v27 = vmax.f32 %v1608_v25, 0.0  ;;  %v3371_v50 = vpop.f32.mrb[62].mxu1 }
 0x43a   :  { %v1623_v51 = vadd.f32 %v3371_v50, %v4590_v62  ;;  %v1617_v30 = vpop.f32.mrb[63].mxu1 }
 0x43b   :  { %v1618_v31 = vadd.f32 %v4590_v62, %v1617_v30  ;;  %3422 = vmatprep.mubr.f32.mxu0 %v1638_v27 }
 0x43c   :  { %3423 = vmatmul.mubr.f32.gmra.mrb[76].mxu0 %v1639_v29  ;;  %v1641_v45 = vmax.f32 %v1623_v51, 0.0 }
 0x43d   :  { %v1640_v63 = vmax.f32 %v1618_v31, 0.0 }
 0x43f   :  { %3425 = vmatprep.mubr.f32.mxu0 %v1640_v63 }
 0x440   :  { %3426 = vmatmul.mubr.f32.gmra.mrb[78].mxu0 %v1641_v45 }
 0x441   :  { %3516 = vmatprep.mubr.f32.mxu0 %v4612_v33 }
 0x4f7   :  { %v3406_v53 = vpop.f32.mrb[64].mxu0 }
 0x4f8   :  { %v1739_v62 = vadd.f32 %v3406_v53, %v4619_v35  ;;  %v1733_v1 = vpop.f32.mrb[65].mxu0 }
 0x4f9   :  { %v1734_v36 = vadd.f32 %v4619_v35, %v1733_v1 }
 0x4fa   :  { %v1813_v37 = vmul.f32 0.2, %v1739_v62 }
 0x4fb   :  { %v1812_v54 = vmul.f32 0.2, %v1734_v36  ;;  %v3409_v38 = vpop.f32.mrb[66].mxu0 }
 0x4fc   :  { %v4624_v39 = vadd.f32 %v1813_v37, %v4521_v12  ;;  %v1749_v41 = vadd.f32 %v3409_v38, %v4619_v35  ;;  %v1743_v42 = vpop.f32.mrb[67].mxu0 }
 0x4fd   :  { %v4628_v44 = vadd.f32 %v1812_v54, %v4524_v14  ;;  %v1744_v52 = vadd.f32 %v4619_v35, %v1743_v42 }
 0x4fe   :  { %v1815_v55 = vmul.f32 0.2, %v1749_v41 }
 0x4ff   :  { %v1814_v2 = vmul.f32 0.2, %v1744_v52  ;;  %v3412_v3 = vpop.f32.mrb[68].mxu0  ;;  %v3940_v56 = vpack.c.bf16 %v4624_v39, %v4628_v44 }
 0x500   :  { %v4634_v4 = vadd.f32 %v1815_v55, %v4531_v22  ;;  %v1759_v12 = vadd.f32 %v3412_v3, %v4619_v35  ;;  %v1753_v5 = vpop.f32.mrb[69].mxu0  ;;  %v4703_v3 = vld [vmem:[#allocation2 + $0x10] sm:$0xff] }
 0x501   :  { %v4638_v7 = vadd.f32 %v1814_v2, %v4534_v26  ;;  %v1754_v14 = vadd.f32 %v4619_v35, %v1753_v5  ;;  %3941 = vmatprep.subr.bf16.mxu1 %v3940_v56  ;;  %v4719_v5 = vld [vmem:[#allocation2 + $0x38] sm:$0xff] }
 0x502   :  { %v1817_v8 = vmul.f32 0.2, %v1759_v12  ;;  %3943 = vmatpush3.bf16.msra.mxu1 %v3940_v56  ;;  %v4709_v56 = vld [vmem:[#allocation2 + $0x20] sm:$0xff]  ;;  %v4715_v12 = vld [vmem:[#allocation2 + $0x30] sm:$0xff] }
 0x503   :  { %v1816_v9 = vmul.f32 0.2, %v1754_v14  ;;  %v3415_v10 = vpop.f32.mrb[70].mxu0  ;;  %v3944_v58 = vpack.c.bf16 %v4634_v4, %v4638_v7  ;;  %v4721_v14 = vld [vmem:[#allocation2 + $0x40] sm:$0xff] }
 0x504   :  { %v4644_v11 = vadd.f32 %v1817_v8, %v4541_v19  ;;  %v1769_v22 = vadd.f32 %v3415_v10, %v4619_v35  ;;  %v1763_v46 = vpop.f32.mrb[71].mxu0  ;;  %v4725_v8 = vld [vmem:[#allocation2 + $0x48] sm:$0xff]  ;;  %v4731_v10 = vld [vmem:[#allocation2 + $0x58] sm:$0xff] }
 0x505   :  { %v4648_v59 = vadd.f32 %v1816_v9, %v4544_v34  ;;  %v1764_v26 = vadd.f32 %v4619_v35, %v1763_v46  ;;  %3945 = vmatprep.subr.bf16.mxu1 %v3944_v58  ;;  %v4727_v9 = vld [vmem:[#allocation2 + $0x50] sm:$0xff] }
 0x506   :  { %v1819_v47 = vmul.f32 0.2, %v1769_v22  ;;  %3947 = vmatpush3.bf16.msra.mxu1 %v3944_v58  ;;  %v4733_v58 = vld [vmem:[#allocation2 + $0x60] sm:$0xff]  ;;  %v4737_v22 = vld [vmem:[#allocation2 + $0x68] sm:$0xff]  ;;  %v4739_v46 = vld [vmem:[#allocation2 + $0x70] sm:$0xff] }
 0x507   :  { %v1818_v13 = vmul.f32 0.2, %v1764_v26  ;;  %v3418_v16 = vpop.f32.mrb[72].mxu0  ;;  %v3948_v48 = vpack.c.bf16 %v4644_v11, %v4648_v59  ;;  %v4743_v26 = vld [vmem:[#allocation2 + $0x78] sm:$0xff] }
 0x508   :  { %v4654_v18 = vadd.f32 %v1819_v47, %v4551_v40  ;;  %v1779_v19 = vadd.f32 %v3418_v16, %v4619_v35  ;;  %v1773_v49 = vpop.f32.mrb[73].mxu0  ;;  %v4748_v47 = vmul.f32 0.1, %v4624_v39 }
 0x509   :  { %v4658_v60 = vadd.f32 %v1818_v13, %v4554_v43  ;;  %v1774_v34 = vadd.f32 %v4619_v35, %v1773_v49  ;;  %3949 = vmatprep.subr.bf16.mxu1 %v3948_v48  ;;  %v4751_v13 = vmul.f32 0.1, %v4628_v44 }
 0x50a   :  { %v1821_v20 = vmul.f32 0.2, %v1779_v19  ;;  %3951 = vmatpush3.bf16.msra.mxu1 %v3948_v48 }
 0x50b   :  { %v1820_v21 = vmul.f32 0.2, %v1774_v34  ;;  %v3421_v61 = vpop.f32.mrb[74].mxu0  ;;  %v3952_v23 = vpack.c.bf16 %v4654_v18, %v4658_v60  ;;  %v4756_v34 = vmul.f32 0.1, %v4634_v4 }
 0x50c   :  { %v4664_v25 = vadd.f32 %v1821_v20, %v4561_v6  ;;  %v1789_v40 = vadd.f32 %v3421_v61, %v4619_v35  ;;  %v1783_v27 = vpop.f32.mrb[75].mxu0  ;;  %v4759_v20 = vmul.f32 0.1, %v4638_v7 }
 0x50d   :  { %v4668_v50 = vadd.f32 %v1820_v21, %v4564_v57  ;;  %v1784_v43 = vadd.f32 %v4619_v35, %v1783_v27  ;;  %3953 = vmatprep.subr.bf16.mxu1 %v3952_v23  ;;  %v4767_v27 = vmul.f32 0.1, %v4648_v59 }
 0x50e   :  { %v1823_v29 = vmul.f32 0.2, %v1789_v40  ;;  %3955 = vmatpush3.bf16.msra.mxu1 %v3952_v23  ;;  %v4764_v40 = vmul.f32 0.1, %v4644_v11 }
 0x50f   :  { %v1822_v51 = vmul.f32 0.2, %v1784_v43  ;;  %v3424_v30 = vpop.f32.mrb[76].mxu0  ;;  %v3956_v31 = vpack.c.bf16 %v4664_v25, %v4668_v50 }
 0x510   :  { %v4674_v63 = vadd.f32 %v1823_v29, %v4571_v15  ;;  %v1799_v6 = vadd.f32 %v3424_v30, %v4619_v35  ;;  %v1793_v45 = vpop.f32.mrb[77].mxu0  ;;  %v4772_v30 = vmul.f32 0.1, %v4654_v18 }
 0x511   :  { %v4678_v53 = vadd.f32 %v1822_v51, %v4574_v17  ;;  %v1794_v57 = vadd.f32 %v4619_v35, %v1793_v45  ;;  %3957 = vmatprep.subr.bf16.mxu1 %v3956_v31 }
 0x512   :  { %v1825_v62 = vmul.f32 0.2, %v1799_v6  ;;  %3959 = vmatpush3.bf16.msra.mxu1 %v3956_v31  ;;  %v4775_v31 = vmul.f32 0.1, %v4658_v60 }
 0x513   :  { %v1824_v1 = vmul.f32 0.2, %v1794_v57  ;;  %v3427_v36 = vpop.f32.mrb[78].mxu0  ;;  %v3960_v37 = vpack.c.bf16 %v4674_v63, %v4678_v53 }
 0x514   :  { %v4684_v54 = vadd.f32 %v1825_v62, %v4581_v0  ;;  %v1809_v15 = vadd.f32 %v3427_v36, %v4619_v35  ;;  %v1803_v38 = vpop.f32.mrb[79].mxu0  ;;  %v4780_v62 = vmul.f32 0.1, %v4664_v25 }
 0x515   :  { %v4688_v41 = vadd.f32 %v1824_v1, %v4584_v28  ;;  %v1804_v17 = vadd.f32 %v4619_v35, %v1803_v38  ;;  %3961 = vmatprep.subr.bf16.mxu1 %v3960_v37  ;;  %v4701_v35 = vld [vmem:[#allocation2 + $0x8] sm:$0xff]  ;;  %v4783_v1 = vmul.f32 0.1, %v4668_v50  ;;  %v4788_v38 = vmul.f32 0.1, %v4674_v63 }
 0x516   :  { %v1827_v42 = vmul.f32 0.2, %v1809_v15  ;;  %3963 = vmatpush3.bf16.msra.mxu1 %v3960_v37 }
 0x517   :  { %v1826_v52 = vmul.f32 0.2, %v1804_v17  ;;  %v3964_v55 = vpack.c.bf16 %v4684_v54, %v4688_v41  ;;  %v4791_v17 = vmul.f32 0.1, %v4678_v53 }
 0x518   :  { %v4694_v2 = vadd.f32 %v1827_v42, %v4592_v32  ;;  %v4707_v32 = vld [vmem:[#allocation2 + $0x18] sm:$0xff] }
 0x519   :  { %v4697_v0 = vadd.f32 %v1826_v52, %v4595_v24  ;;  %3965 = vmatprep.subr.bf16.mxu1 %v3964_v55  ;;  %v4713_v24 = vld [vmem:[#allocation2 + $0x28] sm:$0xff] }
 0x51a   :  { %3967 = vmatpush3.bf16.msra.mxu1 %v3964_v55 }
 0x51b   :  { %v3968_v28 = vpack.c.bf16 %v4694_v2, %v4697_v0 }
 0x51d   :  { %3969 = vmatprep.subr.bf16.mxu1 %v3968_v28 }
 0x51e   :  { %3971 = vmatpush3.bf16.msra.mxu1 %v3968_v28  ;;  %v4796_v28 = vmul.f32 0.1, %v4684_v54 }
 0x521   :  { %3461 = vmatmul.mubr.f32.vlgmr.msra.gmra.mrb[64].mxu1 %v4701_v35 }
 0x522   :  { %3463 = vmatprep.mubr.f32.mxu1 %v4703_v3 }
 0x525   :  { %3464 = vmatmul.mubr.f32.gmra.mrb[66].mxu1 %v4707_v32 }
 0x526   :  { %3466 = vmatprep.mubr.f32.mxu1 %v4709_v56 }
 0x529   :  { %3467 = vmatmul.mubr.f32.gmra.mrb[68].mxu1 %v4713_v24 }
 0x52a   :  { %3469 = vmatprep.mubr.f32.mxu1 %v4715_v12 }
 0x52d   :  { %3470 = vmatmul.mubr.f32.gmra.mrb[70].mxu1 %v4719_v5 }
 0x52e   :  { %3472 = vmatprep.mubr.f32.mxu1 %v4721_v14 }
 0x531   :  { %3473 = vmatmul.mubr.f32.gmra.mrb[72].mxu1 %v4725_v8 }
 0x532   :  { %3475 = vmatprep.mubr.f32.mxu1 %v4727_v9 }
 0x535   :  { %3476 = vmatmul.mubr.f32.gmra.mrb[74].mxu1 %v4731_v10 }
 0x536   :  { %3478 = vmatprep.mubr.f32.mxu1 %v4733_v58 }
 0x539   :  { %3479 = vmatmul.mubr.f32.gmra.mrb[76].mxu1 %v4737_v22 }
 0x53a   :  { %3481 = vmatprep.mubr.f32.mxu1 %v4739_v46 }
 0x53d   :  { %3482 = vmatmul.mubr.f32.gmra.mrb[78].mxu1 %v4743_v26 }
 0x53e   :  { %3572 = vmatprep.mubr.f32.mxu1 %v4612_v33 }
 0x5f4   :  { %v3462_v16 = vpop.f32.mrb[64].mxu1 }
 0x5f5   :  { %v1948_v48 = vadd.f32 %v3462_v16, %v4748_v47  ;;  %v1942_v19 = vpop.f32.mrb[65].mxu1  ;;  %v4799_v16 = vmul.f32 0.1, %v4688_v41 }
 0x5f6   :  { %v1943_v49 = vadd.f32 %v1942_v19, %v4751_v13 }
 0x5f8   :  { %v3972_v21 = vpack.c.bf16 %v1948_v48, %v1943_v49  ;;  %v3465_v61 = vpop.f32.mrb[66].mxu1 }
 0x5f9   :  { %v1958_v39 = vadd.f32 %v3465_v61, %v4756_v34  ;;  %v1952_v23 = vpop.f32.mrb[67].mxu1  ;;  %v4807_v61 = vmul.f32 0.1, %v4697_v0 }
 0x5fa   :  { %v1953_v44 = vadd.f32 %v1952_v23, %v4759_v20  ;;  %3973 = vmatprep.subr.bf16.mxu0 %v3972_v21 }
 0x5fb   :  { %3975 = vmatpush3.bf16.msra.mxu0 %v3972_v21  ;;  %v4804_v21 = vmul.f32 0.1, %v4694_v2 }
 0x5fc   :  { %v3976_v4 = vpack.c.bf16 %v1958_v39, %v1953_v44  ;;  %v3468_v43 = vpop.f32.mrb[68].mxu1 }
 0x5fd   :  { %v1968_v7 = vadd.f32 %v3468_v43, %v4764_v40  ;;  %v1962_v29 = vpop.f32.mrb[69].mxu1 }
 0x5fe   :  { %v1963_v51 = vadd.f32 %v1962_v29, %v4767_v27  ;;  %3977 = vmatprep.subr.bf16.mxu0 %v3976_v4 }
 0x5ff   :  { %3979 = vmatpush3.bf16.msra.mxu0 %v3976_v4 }
 0x600   :  { %v3980_v11 = vpack.c.bf16 %v1968_v7, %v1963_v51  ;;  %v3471_v6 = vpop.f32.mrb[70].mxu1 }
 0x601   :  { %v1978_v59 = vadd.f32 %v3471_v6, %v4772_v30  ;;  %v1972_v45 = vpop.f32.mrb[71].mxu1 }
 0x602   :  { %v1973_v57 = vadd.f32 %v1972_v45, %v4775_v31  ;;  %3981 = vmatprep.subr.bf16.mxu0 %v3980_v11 }
 0x603   :  { %3983 = vmatpush3.bf16.msra.mxu0 %v3980_v11 }
 0x604   :  { %v3984_v18 = vpack.c.bf16 %v1978_v59, %v1973_v57  ;;  %v3474_v36 = vpop.f32.mrb[72].mxu1 }
 0x605   :  { %v1988_v60 = vadd.f32 %v3474_v36, %v4780_v62  ;;  %v1982_v37 = vpop.f32.mrb[73].mxu1 }
 0x606   :  { %v1983_v15 = vadd.f32 %v1982_v37, %v4783_v1  ;;  %3985 = vmatprep.subr.bf16.mxu0 %v3984_v18 }
 0x607   :  { %3987 = vmatpush3.bf16.msra.mxu0 %v3984_v18 }
 0x608   :  { %v3988_v25 = vpack.c.bf16 %v1988_v60, %v1983_v15  ;;  %v3477_v42 = vpop.f32.mrb[74].mxu1 }
 0x609   :  { %v1998_v50 = vadd.f32 %v3477_v42, %v4788_v38  ;;  %v1992_v52 = vpop.f32.mrb[75].mxu1 }
 0x60a   :  { %v1993_v55 = vadd.f32 %v1992_v52, %v4791_v17  ;;  %3989 = vmatprep.subr.bf16.mxu0 %v3988_v25 }
 0x60b   :  { %3991 = vmatpush3.bf16.msra.mxu0 %v3988_v25 }
 0x60c   :  { %v3992_v63 = vpack.c.bf16 %v1998_v50, %v1993_v55  ;;  %v3480_v48 = vpop.f32.mrb[76].mxu1 }
 0x60d   :  { %v2008_v53 = vadd.f32 %v3480_v48, %v4796_v28  ;;  %v2002_v19 = vpop.f32.mrb[77].mxu1 }
 0x60e   :  { %v2003_v49 = vadd.f32 %v2002_v19, %v4799_v16  ;;  %3993 = vmatprep.subr.bf16.mxu0 %v3992_v63 }
 0x60f   :  { %3995 = vmatpush3.bf16.msra.mxu0 %v3992_v63 }
 0x610   :  { %v3996_v54 = vpack.c.bf16 %v2008_v53, %v2003_v49  ;;  %v3483_v39 = vpop.f32.mrb[78].mxu1 }
 0x611   :  { %v2018_v41 = vadd.f32 %v3483_v39, %v4804_v21  ;;  %v2012_v23 = vpop.f32.mrb[79].mxu1 }
 0x612   :  { %v2013_v44 = vadd.f32 %v2012_v23, %v4807_v61  ;;  %3997 = vmatprep.subr.bf16.mxu0 %v3996_v54 }
 0x613   :  { %3999 = vmatpush3.bf16.msra.mxu0 %v3996_v54 }
 0x614   :  { %v4000_v4 = vpack.c.bf16 %v2018_v41, %v2013_v44 }
 0x616   :  { %4001 = vmatprep.subr.bf16.mxu0 %v4000_v4 }
 0x617   :  { %4003 = vmatpush3.bf16.msra.mxu0 %v4000_v4 }
 0x61a   :  { %3517 = vmatmul.mubr.f32.vlgmr.msra.gmra.mrb[80].mxu0 %v4701_v35 }
 0x61b   :  { %3519 = vmatprep.mubr.f32.mxu0 %v4703_v3 }
 0x61e   :  { %3520 = vmatmul.mubr.f32.gmra.mrb[82].mxu0 %v4707_v32 }
 0x61f   :  { %3522 = vmatprep.mubr.f32.mxu0 %v4709_v56 }
 0x622   :  { %3523 = vmatmul.mubr.f32.gmra.mrb[84].mxu0 %v4713_v24 }
 0x623   :  { %3525 = vmatprep.mubr.f32.mxu0 %v4715_v12 }
 0x626   :  { %3526 = vmatmul.mubr.f32.gmra.mrb[86].mxu0 %v4719_v5 }
 0x627   :  { %3528 = vmatprep.mubr.f32.mxu0 %v4721_v14 }
 0x62a   :  { %3529 = vmatmul.mubr.f32.gmra.mrb[88].mxu0 %v4725_v8 }
 0x62b   :  { %3531 = vmatprep.mubr.f32.mxu0 %v4727_v9 }
 0x62e   :  { %3532 = vmatmul.mubr.f32.gmra.mrb[90].mxu0 %v4731_v10 }
 0x62f   :  { %3534 = vmatprep.mubr.f32.mxu0 %v4733_v58 }
 0x632   :  { %3535 = vmatmul.mubr.f32.gmra.mrb[92].mxu0 %v4737_v22 }
 0x633   :  { %3537 = vmatprep.mubr.f32.mxu0 %v4739_v46 }
 0x636   :  { %3538 = vmatmul.mubr.f32.gmra.mrb[94].mxu0 %v4743_v26 }
 0x637   :  { %3628 = vmatprep.mubr.f32.mxu0 %v4612_v33 }
 0x6ed   :  { %v3518_v2 = vpop.f32.mrb[80].mxu0 }
 0x6ee   :  { %v2093_v0 = vadd.f32 %v3518_v2, %v4748_v47  ;;  %v2087_v43 = vpop.f32.mrb[81].mxu0 }
 0x6ef   :  { %v2088_v7 = vadd.f32 %v2087_v43, %v4751_v13 }
 0x6f1   :  { %v4004_v29 = vpack.c.bf16 %v2093_v0, %v2088_v7  ;;  %v3521_v51 = vpop.f32.mrb[82].mxu0 }
 0x6f2   :  { %v2103_v11 = vadd.f32 %v3521_v51, %v4756_v34  ;;  %v2097_v6 = vpop.f32.mrb[83].mxu0 }
 0x6f3   :  { %v2098_v59 = vadd.f32 %v2097_v6, %v4759_v20  ;;  %4005 = vmatprep.subr.bf16.mxu1 %v4004_v29 }
 0x6f4   :  { %4007 = vmatpush3.bf16.msra.mxu1 %v4004_v29 }
 0x6f5   :  { %v4008_v45 = vpack.c.bf16 %v2103_v11, %v2098_v59  ;;  %v3524_v57 = vpop.f32.mrb[84].mxu0 }
 0x6f6   :  { %v2113_v18 = vadd.f32 %v3524_v57, %v4764_v40  ;;  %v2107_v33 = vpop.f32.mrb[85].mxu0 }
 0x6f7   :  { %v2108_v36 = vadd.f32 %v2107_v33, %v4767_v27  ;;  %4009 = vmatprep.subr.bf16.mxu1 %v4008_v45 }
 0x6f8   :  { %4011 = vmatpush3.bf16.msra.mxu1 %v4008_v45 }
 0x6f9   :  { %v4012_v60 = vpack.c.bf16 %v2113_v18, %v2108_v36  ;;  %v3527_v37 = vpop.f32.mrb[86].mxu0 }
 0x6fa   :  { %v2123_v15 = vadd.f32 %v3527_v37, %v4772_v30  ;;  %v2117_v25 = vpop.f32.mrb[87].mxu0 }
 0x6fb   :  { %v2118_v42 = vadd.f32 %v2117_v25, %v4775_v31  ;;  %4013 = vmatprep.subr.bf16.mxu1 %v4012_v60 }
 0x6fc   :  { %4015 = vmatpush3.bf16.msra.mxu1 %v4012_v60 }
 0x6fd   :  { %v4016_v50 = vpack.c.bf16 %v2123_v15, %v2118_v42  ;;  %v3530_v52 = vpop.f32.mrb[88].mxu0 }
 0x6fe   :  { %v2133_v55 = vadd.f32 %v3530_v52, %v4780_v62  ;;  %v2127_v63 = vpop.f32.mrb[89].mxu0 }
 0x6ff   :  { %v2128_v48 = vadd.f32 %v2127_v63, %v4783_v1  ;;  %4017 = vmatprep.subr.bf16.mxu1 %v4016_v50 }
 0x700   :  { %4019 = vmatpush3.bf16.msra.mxu1 %v4016_v50 }
 0x701   :  { %v4020_v53 = vpack.c.bf16 %v2133_v55, %v2128_v48  ;;  %v3533_v19 = vpop.f32.mrb[90].mxu0 }
 0x702   :  { %v2143_v49 = vadd.f32 %v3533_v19, %v4788_v38  ;;  %v2137_v54 = vpop.f32.mrb[91].mxu0 }
 0x703   :  { %v2138_v39 = vadd.f32 %v2137_v54, %v4791_v17  ;;  %4021 = vmatprep.subr.bf16.mxu1 %v4020_v53 }
 0x704   :  { %4023 = vmatpush3.bf16.msra.mxu1 %v4020_v53 }
 0x705   :  { %v4024_v41 = vpack.c.bf16 %v2143_v49, %v2138_v39  ;;  %v3536_v23 = vpop.f32.mrb[92].mxu0 }
 0x706   :  { %v2153_v44 = vadd.f32 %v3536_v23, %v4796_v28  ;;  %v2147_v4 = vpop.f32.mrb[93].mxu0 }
 0x707   :  { %v2148_v2 = vadd.f32 %v2147_v4, %v4799_v16  ;;  %4025 = vmatprep.subr.bf16.mxu1 %v4024_v41 }
 0x708   :  { %4027 = vmatpush3.bf16.msra.mxu1 %v4024_v41 }
 0x709   :  { %v4028_v0 = vpack.c.bf16 %v2153_v44, %v2148_v2  ;;  %v3539_v43 = vpop.f32.mrb[94].mxu0 }
 0x70a   :  { %v2163_v7 = vadd.f32 %v3539_v43, %v4804_v21  ;;  %v2157_v29 = vpop.f32.mrb[95].mxu0 }
 0x70b   :  { %v2158_v51 = vadd.f32 %v2157_v29, %v4807_v61  ;;  %4029 = vmatprep.subr.bf16.mxu1 %v4028_v0 }
 0x70c   :  { %4031 = vmatpush3.bf16.msra.mxu1 %v4028_v0 }
 0x70d   :  { %v4032_v11 = vpack.c.bf16 %v2163_v7, %v2158_v51 }
 0x70f   :  { %4033 = vmatprep.subr.bf16.mxu1 %v4032_v11 }
 0x710   :  { %4035 = vmatpush3.bf16.msra.mxu1 %v4032_v11 }
 0x713   :  { %3573 = vmatmul.mubr.f32.vlgmr.msra.gmra.mrb[80].mxu1 %v4701_v35 }
 0x714   :  { %3575 = vmatprep.mubr.f32.mxu1 %v4703_v3 }
 0x717   :  { %3576 = vmatmul.mubr.f32.gmra.mrb[82].mxu1 %v4707_v32 }
 0x718   :  { %3578 = vmatprep.mubr.f32.mxu1 %v4709_v56 }
 0x71b   :  { %3579 = vmatmul.mubr.f32.gmra.mrb[84].mxu1 %v4713_v24 }
 0x71c   :  { %3581 = vmatprep.mubr.f32.mxu1 %v4715_v12 }
 0x71f   :  { %3582 = vmatmul.mubr.f32.gmra.mrb[86].mxu1 %v4719_v5 }
 0x720   :  { %3584 = vmatprep.mubr.f32.mxu1 %v4721_v14 }
 0x723   :  { %3585 = vmatmul.mubr.f32.gmra.mrb[88].mxu1 %v4725_v8 }
 0x724   :  { %3587 = vmatprep.mubr.f32.mxu1 %v4727_v9 }
 0x727   :  { %3588 = vmatmul.mubr.f32.gmra.mrb[90].mxu1 %v4731_v10 }
 0x728   :  { %3590 = vmatprep.mubr.f32.mxu1 %v4733_v58 }
 0x72b   :  { %3591 = vmatmul.mubr.f32.gmra.mrb[92].mxu1 %v4737_v22 }
 0x72c   :  { %3593 = vmatprep.mubr.f32.mxu1 %v4739_v46 }
 0x72f   :  { %3594 = vmatmul.mubr.f32.gmra.mrb[94].mxu1 %v4743_v26 }
 0x730   :  { %3640 = vmatprep.mubr.f32.mxu1 %v4721_v14 }
 0x7e6   :  { %v3574_v6 = vpop.f32.mrb[80].mxu1 }
 0x7e7   :  { %v2238_v59 = vadd.f32 %v3574_v6, %v4748_v47  ;;  %v2232_v45 = vpop.f32.mrb[81].mxu1 }
 0x7e8   :  { %v2233_v57 = vadd.f32 %v2232_v45, %v4751_v13 }
 0x7ea   :  { %v4036_v18 = vpack.c.bf16 %v2238_v59, %v2233_v57  ;;  %v3577_v33 = vpop.f32.mrb[82].mxu1 }
 0x7eb   :  { %v2248_v36 = vadd.f32 %v3577_v33, %v4756_v34  ;;  %v2242_v60 = vpop.f32.mrb[83].mxu1 }
 0x7ec   :  { %v2243_v37 = vadd.f32 %v2242_v60, %v4759_v20  ;;  %4037 = vmatprep.subr.bf16.mxu0 %v4036_v18  ;;  %4068 = vmatprep.subr.bf16.mxu1 %v4036_v18 }
 0x7ed   :  { %4039 = vmatpush3.bf16.msra.mxu0 %v4036_v18  ;;  %4076 = vmatpush3.bf16.msra.mxu1 %v4036_v18 }
 0x7ee   :  { %v4040_v15 = vpack.c.bf16 %v2248_v36, %v2243_v37  ;;  %v3580_v25 = vpop.f32.mrb[84].mxu1 }
 0x7ef   :  { %v2258_v14 = vadd.f32 %v3580_v25, %v4764_v40  ;;  %v2252_v42 = vpop.f32.mrb[85].mxu1 }
 0x7f0   :  { %v2253_v50 = vadd.f32 %v2252_v42, %v4767_v27  ;;  %4041 = vmatprep.subr.bf16.mxu0 %v4040_v15  ;;  %4069 = vmatprep.subr.bf16.mxu1 %v4040_v15 }
 0x7f1   :  { %4043 = vmatpush3.bf16.msra.mxu0 %v4040_v15  ;;  %4077 = vmatpush3.bf16.msra.mxu1 %v4040_v15 }
 0x7f2   :  { %v4044_v52 = vpack.c.bf16 %v2258_v14, %v2253_v50  ;;  %v3583_v55 = vpop.f32.mrb[86].mxu1 }
 0x7f3   :  { %v2268_v63 = vadd.f32 %v3583_v55, %v4772_v30  ;;  %v2262_v48 = vpop.f32.mrb[87].mxu1 }
 0x7f4   :  { %v2263_v53 = vadd.f32 %v2262_v48, %v4775_v31  ;;  %4045 = vmatprep.subr.bf16.mxu0 %v4044_v52  ;;  %4070 = vmatprep.subr.bf16.mxu1 %v4044_v52 }
 0x7f5   :  { %4047 = vmatpush3.bf16.msra.mxu0 %v4044_v52  ;;  %4078 = vmatpush3.bf16.msra.mxu1 %v4044_v52 }
 0x7f6   :  { %v4048_v19 = vpack.c.bf16 %v2268_v63, %v2263_v53  ;;  %v3586_v49 = vpop.f32.mrb[88].mxu1 }
 0x7f7   :  { %v2278_v54 = vadd.f32 %v3586_v49, %v4780_v62  ;;  %v2272_v39 = vpop.f32.mrb[89].mxu1 }
 0x7f8   :  { %v2273_v41 = vadd.f32 %v2272_v39, %v4783_v1  ;;  %4049 = vmatprep.subr.bf16.mxu0 %v4048_v19  ;;  %4071 = vmatprep.subr.bf16.mxu1 %v4048_v19 }
 0x7f9   :  { %4051 = vmatpush3.bf16.msra.mxu0 %v4048_v19  ;;  %4079 = vmatpush3.bf16.msra.mxu1 %v4048_v19 }
 0x7fa   :  { %v4052_v23 = vpack.c.bf16 %v2278_v54, %v2273_v41  ;;  %v3589_v44 = vpop.f32.mrb[90].mxu1 }
 0x7fb   :  { %v2288_v4 = vadd.f32 %v3589_v44, %v4788_v38  ;;  %v2282_v2 = vpop.f32.mrb[91].mxu1 }
 0x7fc   :  { %v2283_v0 = vadd.f32 %v2282_v2, %v4791_v17  ;;  %4053 = vmatprep.subr.bf16.mxu0 %v4052_v23  ;;  %4072 = vmatprep.subr.bf16.mxu1 %v4052_v23 }
 0x7fd   :  { %4055 = vmatpush3.bf16.msra.mxu0 %v4052_v23  ;;  %4080 = vmatpush3.bf16.msra.mxu1 %v4052_v23 }
 0x7fe   :  { %v4056_v43 = vpack.c.bf16 %v2288_v4, %v2283_v0  ;;  %v3592_v7 = vpop.f32.mrb[92].mxu1 }
 0x7ff   :  { %v2298_v29 = vadd.f32 %v3592_v7, %v4796_v28  ;;  %v2292_v51 = vpop.f32.mrb[93].mxu1 }
 0x800   :  { %v2293_v11 = vadd.f32 %v2292_v51, %v4799_v16  ;;  %4057 = vmatprep.subr.bf16.mxu0 %v4056_v43  ;;  %4073 = vmatprep.subr.bf16.mxu1 %v4056_v43 }
 0x801   :  { %4059 = vmatpush3.bf16.msra.mxu0 %v4056_v43  ;;  %4081 = vmatpush3.bf16.msra.mxu1 %v4056_v43 }
 0x802   :  { %v4060_v6 = vpack.c.bf16 %v2298_v29, %v2293_v11  ;;  %v3595_v59 = vpop.f32.mrb[94].mxu1 }
 0x803   :  { %v2308_v45 = vadd.f32 %v3595_v59, %v4804_v21  ;;  %v2302_v57 = vpop.f32.mrb[95].mxu1 }
 0x804   :  { %v2303_v18 = vadd.f32 %v2302_v57, %v4807_v61  ;;  %4061 = vmatprep.subr.bf16.mxu0 %v4060_v6  ;;  %4074 = vmatprep.subr.bf16.mxu1 %v4060_v6 }
 0x805   :  { %4063 = vmatpush3.bf16.msra.mxu0 %v4060_v6  ;;  %4082 = vmatpush3.bf16.msra.mxu1 %v4060_v6 }
 0x806   :  { %v4064_v33 = vpack.c.bf16 %v2308_v45, %v2303_v18 }
 0x808   :  { %4065 = vmatprep.subr.bf16.mxu0 %v4064_v33  ;;  %4075 = vmatprep.subr.bf16.mxu1 %v4064_v33 }
 0x809   :  { %4067 = vmatpush3.bf16.msra.mxu0 %v4064_v33  ;;  %4083 = vmatpush3.bf16.msra.mxu1 %v4064_v33 }
 0x80c   :  { %3629 = vmatmul.mubr.f32.vlgmr.msra.gmra.mrb[96].mxu0 %v4701_v35  ;;  %3641 = vmatmul.mubr.f32.vlgmr.msra.gmra.mrb[96].mxu1 %v4725_v8 }
 0x80d   :  { %3631 = vmatprep.mubr.f32.mxu0 %v4703_v3  ;;  %3643 = vmatprep.mubr.f32.mxu1 %v4727_v9 }
 0x810   :  { %3632 = vmatmul.mubr.f32.gmra.mrb[98].mxu0 %v4707_v32  ;;  %3644 = vmatmul.mubr.f32.gmra.mrb[98].mxu1 %v4731_v10 }
 0x811   :  { %3634 = vmatprep.mubr.f32.mxu0 %v4709_v56  ;;  %3646 = vmatprep.mubr.f32.mxu1 %v4733_v58 }
 0x814   :  { %3635 = vmatmul.mubr.f32.gmra.mrb[100].mxu0 %v4713_v24  ;;  %3647 = vmatmul.mubr.f32.gmra.mrb[100].mxu1 %v4737_v22 }
 0x815   :  { %3637 = vmatprep.mubr.f32.mxu0 %v4715_v12  ;;  %3649 = vmatprep.mubr.f32.mxu1 %v4739_v46 }
 0x818   :  { %3638 = vmatmul.mubr.f32.gmra.mrb[102].mxu0 %v4719_v5  ;;  %3650 = vmatmul.mubr.f32.gmra.mrb[102].mxu1 %v4743_v26 }
 0x8df   :  { %v3630_v35 = vpop.f32.mrb[96].mxu0  ;;  %v3642_v3 = vpop.f32.mrb[96].mxu1 }
 0x8e0   :  { %v2383_v32 = vadd.f32 %v3630_v35, %v4748_v47  ;;  %v2423_v56 = vadd.f32 %v3642_v3, %v4780_v62  ;;  %v2377_v8 = vpop.f32.mrb[97].mxu0  ;;  %v2417_v9 = vpop.f32.mrb[97].mxu1 }
 0x8e1   :  { %v2378_v24 = vadd.f32 %v2377_v8, %v4751_v13  ;;  %v2418_v10 = vadd.f32 %v2417_v9, %v4783_v1 }
 0x8e2   :  { %2457 = vst [vmem:[#allocation11 + $0x8] sm:$0xff] %v2383_v32  ;;  %2465 = vst [vmem:[#allocation11 + $0x48] sm:$0xff] %v2423_v56 }
 0x8e3   :  { %2456 = vst [vmem:[#allocation11] sm:$0xff] %v2378_v24  ;;  %2464 = vst [vmem:[#allocation11 + $0x40] sm:$0xff] %v2418_v10  ;;  %v3633_v12 = vpop.f32.mrb[98].mxu0  ;;  %v3645_v5 = vpop.f32.mrb[98].mxu1 }
 0x8e4   :  { %v2393_v58 = vadd.f32 %v3633_v12, %v4756_v34  ;;  %v2433_v22 = vadd.f32 %v3645_v5, %v4788_v38  ;;  %v2387_v46 = vpop.f32.mrb[99].mxu0  ;;  %v2427_v26 = vpop.f32.mrb[99].mxu1 }
 0x8e5   :  { %v2388_v47 = vadd.f32 %v2387_v46, %v4759_v20  ;;  %v2428_v62 = vadd.f32 %v2427_v26, %v4791_v17 }
 0x8e6   :  { %2459 = vst [vmem:[#allocation11 + $0x18] sm:$0xff] %v2393_v58  ;;  %2467 = vst [vmem:[#allocation11 + $0x58] sm:$0xff] %v2433_v22 }
 0x8e7   :  { %2458 = vst [vmem:[#allocation11 + $0x10] sm:$0xff] %v2388_v47  ;;  %2466 = vst [vmem:[#allocation11 + $0x50] sm:$0xff] %v2428_v62  ;;  %v3636_v13 = vpop.f32.mrb[100].mxu0  ;;  %v3648_v1 = vpop.f32.mrb[100].mxu1 }
 0x8e8   :  { %v2403_v36 = vadd.f32 %v3636_v13, %v4764_v40  ;;  %v2443_v60 = vadd.f32 %v3648_v1, %v4796_v28  ;;  %v2397_v37 = vpop.f32.mrb[101].mxu0  ;;  %v2437_v34 = vpop.f32.mrb[101].mxu1 }
 0x8e9   :  { %v2398_v38 = vadd.f32 %v2397_v37, %v4767_v27  ;;  %v2438_v15 = vadd.f32 %v2437_v34, %v4799_v16 }
 0x8ea   :  { %2461 = vst [vmem:[#allocation11 + $0x28] sm:$0xff] %v2403_v36  ;;  %2469 = vst [vmem:[#allocation11 + $0x68] sm:$0xff] %v2443_v60 }
 0x8eb   :  { %2460 = vst [vmem:[#allocation11 + $0x20] sm:$0xff] %v2398_v38  ;;  %2468 = vst [vmem:[#allocation11 + $0x60] sm:$0xff] %v2438_v15  ;;  %v3639_v20 = vpop.f32.mrb[102].mxu0  ;;  %v3651_v17 = vpop.f32.mrb[102].mxu1 }
 0x8ec   :  { %v2413_v25 = vadd.f32 %v3639_v20, %v4772_v30  ;;  %v2453_v40 = vadd.f32 %v3651_v17, %v4804_v21  ;;  %v2407_v14 = vpop.f32.mrb[103].mxu0  ;;  %v2447_v28 = vpop.f32.mrb[103].mxu1 }
 0x8ed   :  { %v2408_v42 = vadd.f32 %v2407_v14, %v4775_v31  ;;  %v2448_v27 = vadd.f32 %v2447_v28, %v4807_v61 }
 0x8ee   :  { %2463 = vst [vmem:[#allocation11 + $0x38] sm:$0xff] %v2413_v25  ;;  %2471 = vst [vmem:[#allocation11 + $0x78] sm:$0xff] %v2453_v40 }
 0x8ef   :  { %2462 = vst [vmem:[#allocation11 + $0x30] sm:$0xff] %v2408_v42  ;;  %2470 = vst [vmem:[#allocation11 + $0x70] sm:$0xff] %v2448_v27 }
 0x8f0   :  { %4213 = shalt.err (!%p4210_p2)
}
 0x8f1   :  { %s4214_s30 = scalar_lea.hbm %s4926_s6, 2048 }
 0x8f2   :  { %p4215_p3 = scmp.ne.s32.totalorder %s4926_s6, %s4214_s30  ;;  %p4218_p4 = scmp.lt.u32.totalorder %s4214_s30, %s4926_s6 }
 0x8f4   :  { %p4220_p5 = pnand %p4218_p4, %p4215_p3 }
 0x8f6   :  { %4223 = shalt.err (!%p4220_p5)
}
 0x8f7   :  { %2483 = dma.vmem_to_hbm [thread:$0]  %s2478_s25, 2048, %s4926_s6, [#allocation4], %s4234_s9, %s4234_s9, %s4235_s10  }
 0x8f8   :  { %4230 = dma.done.wait [#allocation4], 2048  }
 0x8f9   :  { %4231 = vsyncadd [#allocation4], 4294965248 }
 0x8fa   :  { %2487 = vsyncpa [#allocation3], 1 }
 0x8fb   :  { %2488 = vsyncpa [#allocation6], 1 }
 0x8fc   :  { %2489 = vsyncpa [#allocation9], 1 }
 0x8fd   :  { %2490 = vsyncpa [#allocation4], 1 }

</bundles_post_ra>
